<compile_context>
chip_gen: v6e
topology: v6e:2x2x1
jax: 0.10.0
libtpu: 0.0.40
codegen_flags: <defaults>
</compile_context>

<pallas_src>
import functools

import jax
import jax.numpy as jnp
from jax.experimental import pallas as pl
from jax.experimental.pallas import tpu as pltpu


# -----------------------------------------------------------------------------
# Pass 1: per-core partial sums of tanh(z @ W1 + b1) over N tiles.
#   grid = (split, tiles_per_core), semantics = ("parallel", "arbitrary")
#   out  = (split, M, H) partial sums; finalized (dot + softmax) in the wrapper.
# -----------------------------------------------------------------------------
def _hidden_sum_kernel(num_paths, feat_dim, n_valid, tile_n, needs_mask,
                       z_ref, w1_ref, b1_ref, out_ref):
    # z_ref: (tn, M*D) f32   w1_ref: (D, H) bf16   b1_ref: (1, H) f32
    # out_ref: (M, H) f32 — resident accumulator across the inner grid axis.
    i = pl.program_id(1)

    @pl.when(i == 0)
    def _():
        out_ref[...] = jnp.zeros_like(out_ref)

    if needs_mask:
        # Only emitted when N was padded up to a tile multiple.
        row0 = (pl.program_id(0) * pl.num_programs(1) + i) * tile_n
        rows = row0 + jax.lax.broadcasted_iota(jnp.int32, (tile_n, 1), 0)
        mask = rows < n_valid

    w1 = w1_ref[...]          # bf16, pre-cast in the wrapper
    b1 = b1_ref[...]          # f32
    for m in range(num_paths):                      # M is static & small
        zm = z_ref[:, pl.ds(m * feat_dim, feat_dim)]            # (tn, D), lane-aligned
        h = jnp.tanh(jnp.dot(zm.astype(jnp.bfloat16), w1,
                             preferred_element_type=jnp.float32) + b1)   # (tn, H)
        if needs_mask:
            h = jnp.where(mask, h, 0.0)
        out_ref[pl.ds(m, 1), :] += jnp.sum(h, axis=0, keepdims=True)     # (1, H)


# -----------------------------------------------------------------------------
# Pass 2: beta-weighted sum over metapaths, tiled over N ("parallel").
# -----------------------------------------------------------------------------
def _weighted_sum_kernel(num_paths, feat_dim, beta_ref, z_ref, o_ref):
    # beta_ref: (M, 1) f32 in SMEM; z_ref: (tn, M*D) f32; o_ref: (tn, D) f32
    acc = beta_ref[0, 0] * z_ref[:, pl.ds(0, feat_dim)]
    for m in range(1, num_paths):
        acc = acc + beta_ref[m, 0] * z_ref[:, pl.ds(m * feat_dim, feat_dim)]
    o_ref[...] = acc


# -----------------------------------------------------------------------------
# Wrapper.
# -----------------------------------------------------------------------------
def _pick_tile_n(n, target):
    """N-tile that is a multiple of 8, never N-huge and never 8-tiny."""
    target = max(8, (target // 8) * 8)
    if n <= target:
        return ((n + 7) // 8) * 8          # single (possibly padded) tile
    for t in range(target, 127, -8):       # largest divisor of n in [128, target]
        if n % t == 0:
            return t
    return target                          # no nice divisor: pad + mask


def semantic_attention(z, w1, b1, w2, *, tile_n=1024):
    """SemanticAttention forward.

    z:  (N, M, D)  stacked per-metapath node embeddings (PyTorch layout)
    w1: (D, H), b1: (1, H), w2: (H, 1)  parameters of `project`
    returns: (N, D)
    """
    N, M, D = z.shape
    H = w1.shape[1]

    # Free reshape of the contiguous array — replaces the old HBM transpose.
    z2 = z.reshape(N, M * D)

    tn = _pick_tile_n(N, tile_n)
    n_tiles = pl.cdiv(N, tn)
    n_pad = n_tiles * tn
    needs_mask = n_pad != N
    if needs_mask:
        z2 = jnp.pad(z2, ((0, n_pad - N), (0, 0)))

    # Split the mem-bound pass-1 reduction across two TensorCores (v7x); on
    # single-TC chips the "parallel" axis simply runs sequentially.
    split = 2 if (n_tiles % 2 == 0 and n_tiles >= 2) else 1
    tiles_per_core = n_tiles // split

    w1_bf = w1.astype(jnp.bfloat16)        # pre-cast once, outside the grid loop

    # Explicit VMEM budget: double-buffered z tile + pass-2 output tile + slack.
    z_tile_bytes = tn * M * D * z2.dtype.itemsize
    out_tile_bytes = tn * D * 4
    vmem_limit = int(min(64 << 20,
                         max(32 << 20,
                             2 * z_tile_bytes + 2 * out_tile_bytes + (4 << 20))))

    partial = pl.pallas_call(
        functools.partial(_hidden_sum_kernel, M, D, N, tn, needs_mask),
        out_shape=jax.ShapeDtypeStruct((split, M, H), jnp.float32),
        grid=(split, tiles_per_core),
        in_specs=[
            pl.BlockSpec((tn, M * D), lambda c, i: (c * tiles_per_core + i, 0)),
            pl.BlockSpec((D, H), lambda c, i: (0, 0)),
            pl.BlockSpec((1, H), lambda c, i: (0, 0)),
        ],
        out_specs=pl.BlockSpec((None, M, H), lambda c, i: (c, 0, 0)),
        compiler_params=pltpu.CompilerParams(
            dimension_semantics=("parallel", "arbitrary"),
            vmem_limit_bytes=vmem_limit),
    )(z2, w1_bf, b1)

    # Tiny finalize (M x H): combine per-core partials, mean over N, score dot
    # and an *exact* softmax — negligible cost in plain JAX.
    hsum = jnp.sum(partial, axis=0)                    # (M, H)
    scores = (hsum @ w2) * (1.0 / N)                   # (M, 1)
    beta = jax.nn.softmax(scores, axis=0)              # (M, 1)

    out = pl.pallas_call(
        functools.partial(_weighted_sum_kernel, M, D),
        out_shape=jax.ShapeDtypeStruct((n_pad, D), jnp.float32),
        grid=(n_tiles,),
        in_specs=[
            pl.BlockSpec(memory_space=pltpu.MemorySpace.SMEM),   # beta scalars
            pl.BlockSpec((tn, M * D), lambda i: (i, 0)),
        ],
        out_specs=pl.BlockSpec((tn, D), lambda i: (i, 0)),
        compiler_params=pltpu.CompilerParams(
            dimension_semantics=("parallel",),
            vmem_limit_bytes=vmem_limit),
    )(beta, z2)

    return out[:N] if needs_mask else out


# -----------------------------------------------------------------------------
# Pure-JAX reference (matches the PyTorch module exactly, f32).
# -----------------------------------------------------------------------------
def semantic_attention_ref(z, w1, b1, w2):
    h = jnp.tanh(z @ w1 + b1)                        # (N, M, H)
    w = jnp.mean(h @ w2, axis=0)                     # (M, 1)
    beta = jax.nn.softmax(w, axis=0)                 # (M, 1)
    return jnp.sum(beta[None, :, :] * z, axis=1)     # (N, D)


if __name__ == "__main__":
    M, D, H = 3, 256, 128
    key = jax.random.PRNGKey(0)
    kz, k1, kb, k2 = jax.random.split(key, 4)
    w1 = 0.1 * jax.random.normal(k1, (D, H), jnp.float32)
    b1 = 0.1 * jax.random.normal(kb, (1, H), jnp.float32)
    w2 = 0.1 * jax.random.normal(k2, (H, 1), jnp.float32)

    # Config A: divisible N — exercises multi-tile accumulation + 2-way core
    # split.  Config B: awkward N — exercises padding + in-kernel row masking.
    for N in (512, 200):
        z = jax.random.normal(jax.random.fold_in(kz, N), (N, M, D), jnp.float32)
        fwd = jax.jit(functools.partial(semantic_attention, tile_n=128))
        out = jax.block_until_ready(fwd(z, w1, b1, w2))
        ref = semantic_attention_ref(z, w1, b1, w2)
        assert out.shape == (N, D)
        assert bool(jnp.all(jnp.isfinite(out)))
        err = float(jnp.max(jnp.abs(out - ref)))
        assert err < 5e-2, f"N={N}: max abs error {err}"

    print("KERNEL_OK")
</pallas_src>

<mosaic_0001>
module attributes {stable_mosaic.version = 11 : i64} {
  func.func @_hidden_sum_kernel(%arg0: i32, %arg1: i32, %arg2: memref<128x768xf32, #tpu.memory_space<vmem>>, %arg3: memref<256x128xbf16, #tpu.memory_space<vmem>>, %arg4: memref<1x128xf32, #tpu.memory_space<vmem>>, %arg5: memref<1x3x128xf32, #tpu.memory_space<vmem>>) attributes {dimension_semantics = [#tpu.dimension_semantics<parallel>, #tpu.dimension_semantics<arbitrary>], iteration_bounds = array<i64: 2, 2>, scalar_prefetch = 0 : i64, scratch_operands = 0 : i64, tpu.core_type = #tpu.core_type<tc>, window_params = [{transform_indices = @transform_0, window_bounds = array<i64: 128, 768>}, {pipeline_mode = #tpu.pipeline_mode<synchronous>, transform_indices = @transform_1, window_bounds = array<i64: 256, 128>}, {pipeline_mode = #tpu.pipeline_mode<synchronous>, transform_indices = @transform_2, window_bounds = array<i64: 1, 128>}, {transform_indices = @transform_3, window_bounds = array<i64: 1, 3, 128>}]} {
    %c0_i32 = arith.constant 0 : i32
    %0 = arith.cmpi eq, %arg1, %c0_i32 : i32
    %1 = arith.extui %0 : i1 to i32
    %c0_i32_0 = arith.constant 0 : i32
    %2 = arith.cmpi ne, %1, %c0_i32_0 : i32
    scf.if %2 {
      %cst_29 = arith.constant 0.000000e+00 : f32
      %47 = vector.broadcast %cst_29 : f32 to vector<3x128xf32>
      %c0_30 = arith.constant 0 : index
      %c0_31 = arith.constant 0 : index
      %c0_32 = arith.constant 0 : index
      %48 = vector.load %arg5[%c0_30, %c0_31, %c0_32] : memref<1x3x128xf32, #tpu.memory_space<vmem>>, vector<1x3x128xf32>
      %49 = vector.shape_cast %48 : vector<1x3x128xf32> to vector<3x128xf32>
      %50 = vector.shape_cast %47 : vector<3x128xf32> to vector<1x3x128xf32>
      tpu.vector_store %arg5[%c0_30, %c0_31, %c0_32], %50 {strides = array<i32>} : memref<1x3x128xf32, #tpu.memory_space<vmem>>, vector<1x3x128xf32>,
    } else {
    }
    %c0 = arith.constant 0 : index
    %c0_1 = arith.constant 0 : index
    %3 = vector.load %arg3[%c0, %c0_1] : memref<256x128xbf16, #tpu.memory_space<vmem>>, vector<256x128xbf16>
    %c0_2 = arith.constant 0 : index
    %c0_3 = arith.constant 0 : index
    %4 = vector.load %arg4[%c0_2, %c0_3] : memref<1x128xf32, #tpu.memory_space<vmem>>, vector<1x128xf32>
    %c0_4 = arith.constant 0 : index
    %c0_5 = arith.constant 0 : index
    %5 = vector.load %arg2[%c0_4, %c0_5] : memref<128x768xf32, #tpu.memory_space<vmem>>, vector<128x256xf32>
    %6 = arith.truncf %5 : vector<128x256xf32> to vector<128x256xbf16>
    %cst = arith.constant dense<0.000000e+00> : vector<128x128xf32>
    %7 = tpu.matmul %6, %3, %cst {dimension_numbers = #tpu.dot_dimension_numbers<[1], [0], [0], [1], [0, 0, 1, 1], [], []>} : vector<128x256xbf16>, vector<256x128xbf16>, vector<128x128xf32> -> vector<128x128xf32>
    %8 = vector.broadcast %4 : vector<1x128xf32> to vector<128x128xf32>
    %9 = arith.addf %7, %8 : vector<128x128xf32>
    %10 = math.tanh %9 : vector<128x128xf32>
    %c0_6 = arith.constant 0 : index
    %c0_7 = arith.constant 0 : index
    %c0_8 = arith.constant 0 : index
    %11 = vector.load %arg5[%c0_6, %c0_7, %c0_8] : memref<1x3x128xf32, #tpu.memory_space<vmem>>, vector<1x1x128xf32>
    %12 = vector.shape_cast %11 : vector<1x1x128xf32> to vector<1x128xf32>
    %cst_9 = arith.constant dense<0.000000e+00> : vector<128xf32>
    %13 = vector.multi_reduction <add>, %10, %cst_9 [0] : vector<128x128xf32> to vector<128xf32>
    %14 = vector.shape_cast %13 : vector<128xf32> to vector<1x128xf32>
    %15 = arith.addf %12, %14 : vector<1x128xf32>
    %c0_10 = arith.constant 0 : index
    %c0_11 = arith.constant 0 : index
    %c0_12 = arith.constant 0 : index
    %16 = vector.load %arg5[%c0_10, %c0_11, %c0_12] : memref<1x3x128xf32, #tpu.memory_space<vmem>>, vector<1x1x128xf32>
    %17 = vector.shape_cast %16 : vector<1x1x128xf32> to vector<1x128xf32>
    %18 = vector.shape_cast %15 : vector<1x128xf32> to vector<1x1x128xf32>
    tpu.vector_store %arg5[%c0_10, %c0_11, %c0_12], %18 {strides = array<i32>} : memref<1x3x128xf32, #tpu.memory_space<vmem>>, vector<1x1x128xf32>,
    %c0_13 = arith.constant 0 : index
    %c256 = arith.constant 256 : index
    %19 = vector.load %arg2[%c0_13, %c256] : memref<128x768xf32, #tpu.memory_space<vmem>>, vector<128x256xf32>
    %20 = arith.truncf %19 : vector<128x256xf32> to vector<128x256xbf16>
    %cst_14 = arith.constant dense<0.000000e+00> : vector<128x128xf32>
    %21 = tpu.matmul %20, %3, %cst_14 {dimension_numbers = #tpu.dot_dimension_numbers<[1], [0], [0], [1], [0, 0, 1, 1], [], []>} : vector<128x256xbf16>, vector<256x128xbf16>, vector<128x128xf32> -> vector<128x128xf32>
    %22 = vector.broadcast %4 : vector<1x128xf32> to vector<128x128xf32>
    %23 = arith.addf %21, %22 : vector<128x128xf32>
    %24 = math.tanh %23 : vector<128x128xf32>
    %c0_15 = arith.constant 0 : index
    %c1 = arith.constant 1 : index
    %c0_16 = arith.constant 0 : index
    %25 = vector.load %arg5[%c0_15, %c1, %c0_16] : memref<1x3x128xf32, #tpu.memory_space<vmem>>, vector<1x1x128xf32>
    %26 = vector.shape_cast %25 : vector<1x1x128xf32> to vector<1x128xf32>
    %cst_17 = arith.constant dense<0.000000e+00> : vector<128xf32>
    %27 = vector.multi_reduction <add>, %24, %cst_17 [0] : vector<128x128xf32> to vector<128xf32>
    %28 = vector.shape_cast %27 : vector<128xf32> to vector<1x128xf32>
    %29 = arith.addf %26, %28 : vector<1x128xf32>
    %c0_18 = arith.constant 0 : index
    %c1_19 = arith.constant 1 : index
    %c0_20 = arith.constant 0 : index
    %30 = vector.load %arg5[%c0_18, %c1_19, %c0_20] : memref<1x3x128xf32, #tpu.memory_space<vmem>>, vector<1x1x128xf32>
    %31 = vector.shape_cast %30 : vector<1x1x128xf32> to vector<1x128xf32>
    %32 = vector.shape_cast %29 : vector<1x128xf32> to vector<1x1x128xf32>
    tpu.vector_store %arg5[%c0_18, %c1_19, %c0_20], %32 {strides = array<i32>} : memref<1x3x128xf32, #tpu.memory_space<vmem>>, vector<1x1x128xf32>,
    %c0_21 = arith.constant 0 : index
    %c512 = arith.constant 512 : index
    %33 = vector.load %arg2[%c0_21, %c512] : memref<128x768xf32, #tpu.memory_space<vmem>>, vector<128x256xf32>
    %34 = arith.truncf %33 : vector<128x256xf32> to vector<128x256xbf16>
    %cst_22 = arith.constant dense<0.000000e+00> : vector<128x128xf32>
    %35 = tpu.matmul %34, %3, %cst_22 {dimension_numbers = #tpu.dot_dimension_numbers<[1], [0], [0], [1], [0, 0, 1, 1], [], []>} : vector<128x256xbf16>, vector<256x128xbf16>, vector<128x128xf32> -> vector<128x128xf32>
    %36 = vector.broadcast %4 : vector<1x128xf32> to vector<128x128xf32>
    %37 = arith.addf %35, %36 : vector<128x128xf32>
    %38 = math.tanh %37 : vector<128x128xf32>
    %c0_23 = arith.constant 0 : index
    %c2 = arith.constant 2 : index
    %c0_24 = arith.constant 0 : index
    %39 = vector.load %arg5[%c0_23, %c2, %c0_24] : memref<1x3x128xf32, #tpu.memory_space<vmem>>, vector<1x1x128xf32>
    %40 = vector.shape_cast %39 : vector<1x1x128xf32> to vector<1x128xf32>
    %cst_25 = arith.constant dense<0.000000e+00> : vector<128xf32>
    %41 = vector.multi_reduction <add>, %38, %cst_25 [0] : vector<128x128xf32> to vector<128xf32>
    %42 = vector.shape_cast %41 : vector<128xf32> to vector<1x128xf32>
    %43 = arith.addf %40, %42 : vector<1x128xf32>
    %c0_26 = arith.constant 0 : index
    %c2_27 = arith.constant 2 : index
    %c0_28 = arith.constant 0 : index
    %44 = vector.load %arg5[%c0_26, %c2_27, %c0_28] : memref<1x3x128xf32, #tpu.memory_space<vmem>>, vector<1x1x128xf32>
    %45 = vector.shape_cast %44 : vector<1x1x128xf32> to vector<1x128xf32>
    %46 = vector.shape_cast %43 : vector<1x128xf32> to vector<1x1x128xf32>
    tpu.vector_store %arg5[%c0_26, %c2_27, %c0_28], %46 {strides = array<i32>} : memref<1x3x128xf32, #tpu.memory_space<vmem>>, vector<1x1x128xf32>,
    return
  }
  func.func @transform_0(%arg0: i32, %arg1: i32) -> (i32, i32) {
    %c2_i32 = arith.constant 2 : i32
    %0 = arith.muli %arg0, %c2_i32 : i32
    %1 = arith.addi %0, %arg1 : i32
    %c0_i32 = arith.constant 0 : i32
    %c0_i32_0 = arith.constant 0 : i32
    return %1, %c0_i32 : i32, i32
  }
  func.func @transform_1(%arg0: i32, %arg1: i32) -> (i32, i32) {
    %c0_i32 = arith.constant 0 : i32
    %c0_i32_0 = arith.constant 0 : i32
    %c0_i32_1 = arith.constant 0 : i32
    return %c0_i32, %c0_i32_0 : i32, i32
  }
  func.func @transform_2(%arg0: i32, %arg1: i32) -> (i32, i32) {
    %c0_i32 = arith.constant 0 : i32
    %c0_i32_0 = arith.constant 0 : i32
    %c0_i32_1 = arith.constant 0 : i32
    return %c0_i32, %c0_i32_0 : i32, i32
  }
  func.func @transform_3(%arg0: i32, %arg1: i32) -> (i32, i32, i32) {
    %c0_i32 = arith.constant 0 : i32
    %c0_i32_0 = arith.constant 0 : i32
    %c0_i32_1 = arith.constant 0 : i32
    return %arg0, %c0_i32, %c0_i32_0 : i32, i32, i32
  }
}

module attributes {stable_mosaic.version = 11 : i64} {
  func.func @_weighted_sum_kernel(%arg0: i32, %arg1: memref<3x1xf32, #tpu.memory_space<smem>>, %arg2: memref<128x768xf32, #tpu.memory_space<vmem>>, %arg3: memref<128x256xf32, #tpu.memory_space<vmem>>) attributes {dimension_semantics = [#tpu.dimension_semantics<parallel>], iteration_bounds = array<i64: 4>, scalar_prefetch = 0 : i64, scratch_operands = 0 : i64, tpu.core_type = #tpu.core_type<tc>, window_params = [{transform_indices = @transform_0, window_bounds = array<i64: 3, 1>}, {transform_indices = @transform_1, window_bounds = array<i64: 128, 768>}, {transform_indices = @transform_2, window_bounds = array<i64: 128, 256>}]} {
    %c0 = arith.constant 0 : index
    %c0_0 = arith.constant 0 : index
    %0 = memref.load %arg1[%c0, %c0_0] : memref<3x1xf32, #tpu.memory_space<smem>>
    %c0_1 = arith.constant 0 : index
    %c0_2 = arith.constant 0 : index
    %1 = vector.load %arg2[%c0_1, %c0_2] : memref<128x768xf32, #tpu.memory_space<vmem>>, vector<128x256xf32>
    %2 = vector.broadcast %0 : f32 to vector<128x256xf32>
    %3 = arith.mulf %2, %1 : vector<128x256xf32>
    %c1 = arith.constant 1 : index
    %c0_3 = arith.constant 0 : index
    %4 = memref.load %arg1[%c1, %c0_3] : memref<3x1xf32, #tpu.memory_space<smem>>
    %c0_4 = arith.constant 0 : index
    %c256 = arith.constant 256 : index
    %5 = vector.load %arg2[%c0_4, %c256] : memref<128x768xf32, #tpu.memory_space<vmem>>, vector<128x256xf32>
    %6 = vector.broadcast %4 : f32 to vector<128x256xf32>
    %7 = arith.mulf %6, %5 : vector<128x256xf32>
    %8 = arith.addf %3, %7 : vector<128x256xf32>
    %c2 = arith.constant 2 : index
    %c0_5 = arith.constant 0 : index
    %9 = memref.load %arg1[%c2, %c0_5] : memref<3x1xf32, #tpu.memory_space<smem>>
    %c0_6 = arith.constant 0 : index
    %c512 = arith.constant 512 : index
    %10 = vector.load %arg2[%c0_6, %c512] : memref<128x768xf32, #tpu.memory_space<vmem>>, vector<128x256xf32>
    %11 = vector.broadcast %9 : f32 to vector<128x256xf32>
    %12 = arith.mulf %11, %10 : vector<128x256xf32>
    %13 = arith.addf %8, %12 : vector<128x256xf32>
    %c0_7 = arith.constant 0 : index
    %c0_8 = arith.constant 0 : index
    %14 = vector.load %arg3[%c0_7, %c0_8] : memref<128x256xf32, #tpu.memory_space<vmem>>, vector<128x256xf32>
    tpu.vector_store %arg3[%c0_7, %c0_8], %13 {strides = array<i32>} : memref<128x256xf32, #tpu.memory_space<vmem>>, vector<128x256xf32>,
    return
  }
  func.func @transform_0(%arg0: i32) -> (i32, i32) {
    %c0_i32 = arith.constant 0 : i32
    %c0_i32_0 = arith.constant 0 : i32
    %c0_i32_1 = arith.constant 0 : i32
    return %c0_i32, %c0_i32_0 : i32, i32
  }
  func.func @transform_1(%arg0: i32) -> (i32, i32) {
    %c0_i32 = arith.constant 0 : i32
    %c0_i32_0 = arith.constant 0 : i32
    return %arg0, %c0_i32 : i32, i32
  }
  func.func @transform_2(%arg0: i32) -> (i32, i32) {
    %c0_i32 = arith.constant 0 : i32
    %c0_i32_0 = arith.constant 0 : i32
    return %arg0, %c0_i32 : i32, i32
  }
}

</mosaic_0001>

<bundles_post_ra>
// kernel: semantic_attention.3
= control target key start
LH: loop header
LB: loop body
LE: loop exit
PB: predicated region body
PF: predicated region fallthrough
CT: control target
= control target key end

     0   :  { %7 = vsyncpa [#allocation4], 0  ;;  %s1078_s0 = inlined_call_operand.vmem [shape: f32[3,1], index: 0, kind: input, shape index: {}]   ;;  %s1079_s1 = inlined_call_operand.vmem [shape: f32[512,768], index: 1, kind: input, shape index: {}]   ;;  %s1080_s2 = inlined_call_operand.hbm [shape: f32[512,256], index: 2, kind: output, shape index: {}]  }
   0x1   :  { %8 = vsyncpa [#allocation3], 0 }
   0x2   :  { %10 = vsyncpa [#allocation3 + $0x1], 0  ;;  %s717_s9 = smov 0   ;;  %s719_s10 = smov 0  }
   0x3   :  { %s721_s11 = smov 0   ;;  %s723_s12 = smov 0  }
   0x4 LB: > { %s738_s13 = sadd.s32 4294967295, %s696_s12   ;;  %s545_s14 = sadd.s32 4294967294, %s696_s12   ;;  %s696_s12 = sphi %s723_s12, %s1087_s12   ;;  %s692_s11 = sphi %s721_s11, %s1086_s11   ;;  %s688_s10 = sphi %s719_s10, %s1085_s10   ;;  %s684_s9 = sphi %s717_s9, %s1084_s9  }
   0x5   : > { %s742_s15 = sadd.s32 1, %s696_s12   ;;  %s70_s16 = sadd.s32 1, %s692_s11 }
   0x6   : > { %s67_s17 = ssub.s32 %s696_s12, %s742_s15  ;;  %p80_p0 = scmp.ne.s32.totalorder %s692_s11, %s688_s10 }
   0x7   : > { %p68_p1 = scmp.eq.s32.totalorder %s67_s17, 0  ;;  %p81_p2 = scmp.eq.s32.totalorder %s738_s13, 3 }
   0x8   : > { %p86_p3 = scmp.ne.s32.totalorder %s688_s10, %s684_s9  ;;  %p87_p4 = scmp.eq.s32.totalorder %s545_s14, 3 }
   0x9   : > { %s753_s18 = scalar_select %p68_p1, %s692_s11, %s70_s16  }
   0xa   : > { %p755_p5 = por %p81_p2, %p80_p0  ;;  %p759_p6 = por %p87_p4, %p86_p3 }
   0xb   : > { %p546_p7 = scmp.ge.s32.totalorder %s696_s12, 1  ;;  %p94_p8 = scmp.lt.s32.totalorder %s696_s12, 5 }
   0xc   : > { %p579_p9 = scmp.eq.s32.totalorder %s738_s13, 0  ;;  %s107_s24 = sshll.u32 %s1078_s0, 4  ;;  %s108_s24 = int_to_ptr.vmem [resolvable:$true] %s107_s24 }
   0xd   : > { %p766_p10 = pnand %p546_p7, %p94_p8  ;;  %s617_s25 = scalar_lea.vmem %s108_s24, 64 }
   0xe   : > { %p618_p13 = scmp.ne.s32.totalorder %s108_s24, %s617_s25  ;;  %p625_p3 = scmp.lt.s32.totalorder %s108_s24, %s108_s24 }
   0xf   : > { %p571_p11 = pneg %p766_p10  ;;  %p626_p4 = scmp.lt.s32.totalorder %s617_s25, %s617_s25 }
  0x11   : > { %p572_p12 = pnand %p579_p9, %p571_p11  ;;  %p627_p7 = por %p626_p4, %p625_p3 }
  0x13   : > { %p619_p0 = pneg %p572_p12 }
  0x15   : > { %p620_p1 = pnand %p619_p0, %p618_p13 }
  0x17   : > { %p621_p2 = pneg %p620_p1 }
  0x19   : > { %p628_p8 = pnand %p627_p7, %p621_p2 }
  0x1b   : > { %631 = shalt.err (!%p628_p8)
}
  0x1c   : > { %s698_s26 = smov [#allocation2]   ;;  %130 = sbr.rel (%p766_p10) target bundleno = 102 (0x66), region = 28 }
  0x1d   : > { %574 = dma.vmem_to_smem (!%p572_p12), %s108_s24, 64, %s698_s26, [#allocation4]  }
  0x21   : > { %675 = dma.done.wait (%p579_p9), [#allocation4], 64  }
  0x22   : > { %677 = vsyncadd (%p579_p9), [#allocation4], 4294967232 }
  0x23   : > { %136 = sfence }
  0x24   : > { %s552_s27 = sshll.u32 %s738_s13, 4  ;;  %s162_s28 = sld [smem:[#allocation2]] }
  0x25   : > { %p155_p11 = scmp.lt.s32.totalorder %s552_s27, 63  ;;  %s554_s29 = sld [smem:[#allocation2 + $0x80]] }
  0x26   : > { %s555_s3 = sld [smem:[#allocation2 + $0x100]]  ;;  %s151_s7 = sand.u32 1, %s688_s10  }
  0x27   : > { %s1089_s27 = smov (!%p155_p11, %s552_s27), 63  ;;  %s807_s8 = sshll.u32 %s151_s7, 8 }
  0x28   : > { %s564_s30 = smul.u32 48, %s1089_s27  ;;  %s843_s14 = scalar_lea.vmem [#allocation5], %s807_s8 }
  0x29   : > { %s563_s16 = sshll.u32 %s738_s13, 12  ;;  %s471_s17 = sshll.u32 %s843_s14, 4  ;;  %s1031_s17 = int_to_ptr.vmem [resolvable:$true] %s471_s17 }
  0x2a   : > { %s787_s6 = scalar_lea.vmem %s1079_s1, %s564_s30  ;;  %v791_v1 = vstv %s162_s28  ;;  %s1029_s23 = scalar_lea.hbm %s1080_s2, %s563_s16 }
  0x2b   : > { %v163_v0 = vld [vmem:[%s787_s6] sm:$0xff]  ;;  %v229_v2 = vld [vmem:[%s787_s6 + $0x10] sm:$0xff]  ;;  %v164_v5 = vld [vmem:[%s787_s6 + $0x8] sm:$0xff]  ;;  %v799_v8 = vstv %s554_s29  ;;  %s1038_s13 = scalar_lea.sflag [#allocation3], %s151_s7  ;;  %s632_s24 = scalar_lea.vmem %s1031_s17, 4096 }
  0x2c   : > { %v327_v3 = vld [vmem:[%s787_s6 + $0x20] sm:$0xff]  ;;  %v196_v4 = vmul.f32 %v791_v1, %v163_v0  ;;  %v230_v6 = vld [vmem:[%s787_s6 + $0x18] sm:$0xff]  ;;  %v328_v7 = vld [vmem:[%s787_s6 + $0x28] sm:$0xff]  ;;  %v197_v9 = vmul.f32 %v791_v1, %v164_v5  ;;  %v262_v13 = vmul.f32 %v799_v8, %v229_v2  ;;  %v810_v14 = vstv %s555_s3  ;;  %p633_p9 = scmp.ne.s32.totalorder %s1031_s17, %s632_s24  ;;  %s699_s25 = smov [#allocation5]  }
  0x2d   : > { %v165_v10 = vld [vmem:[%s787_s6 + $0x30] sm:$0xff]  ;;  %v231_v11 = vld [vmem:[%s787_s6 + $0x40] sm:$0xff]  ;;  %v263_v15 = vmul.f32 %v799_v8, %v230_v6  ;;  %v166_v17 = vld [vmem:[%s787_s6 + $0x38] sm:$0xff]  ;;  %v360_v20 = vmul.f32 %v810_v14, %v327_v3  ;;  %v361_v21 = vmul.f32 %v810_v14, %v328_v7  ;;  %s636_s26 = sshll.u32 %s699_s25, 4  ;;  %s637_s26 = int_to_ptr.vmem [resolvable:$false] %s636_s26 }
  0x2e   : > { %v329_v12 = vld [vmem:[%s787_s6 + $0x50] sm:$0xff]  ;;  %v198_v16 = vmul.f32 %v791_v1, %v165_v10  ;;  %v232_v18 = vld [vmem:[%s787_s6 + $0x48] sm:$0xff]  ;;  %v330_v19 = vld [vmem:[%s787_s6 + $0x58] sm:$0xff]  ;;  %v264_v22 = vmul.f32 %v799_v8, %v231_v11  ;;  %v294_v27 = vadd.f32 %v262_v13, %v196_v4  ;;  %v199_v29 = vmul.f32 %v791_v1, %v166_v17  ;;  %p634_p10 = pnand %p633_p9, %p755_p5  ;;  %s638_s27 = scalar_lea.vmem %s637_s26, 8192 }
  0x2f   : > { %v362_v23 = vmul.f32 %v810_v14, %v329_v12  ;;  %v167_v24 = vld [vmem:[%s787_s6 + $0x60] sm:$0xff]  ;;  %v233_v25 = vld [vmem:[%s787_s6 + $0x70] sm:$0xff]  ;;  %v295_v28 = vadd.f32 %v263_v15, %v197_v9  ;;  %v265_v30 = vmul.f32 %v799_v8, %v232_v18  ;;  %v168_v31 = vld [vmem:[%s787_s6 + $0x68] sm:$0xff]  ;;  %v363_v34 = vmul.f32 %v810_v14, %v330_v19  ;;  %p639_p13 = scmp.lt.s32.totalorder %s1031_s17, %s637_s26  ;;  %p640_p0 = scmp.lt.s32.totalorder %s638_s27, %s632_s24 }
  0x30   : > { %v331_v26 = vld [vmem:[%s787_s6 + $0x80] sm:$0xff]  ;;  %v234_v32 = vld [vmem:[%s787_s6 + $0x78] sm:$0xff]  ;;  %v296_v33 = vadd.f32 %v264_v22, %v198_v16  ;;  %v200_v35 = vmul.f32 %v791_v1, %v167_v24  ;;  %v266_v36 = vmul.f32 %v799_v8, %v233_v25  ;;  %v332_v37 = vld [vmem:[%s787_s6 + $0x88] sm:$0xff]  ;;  %v392_v40 = vadd.f32 %v360_v20, %v294_v27  ;;  %p635_p12 = pneg %p634_p10 }
  0x31   : > { %v169_v38 = vld [vmem:[%s787_s6 + $0x90] sm:$0xff]  ;;  %v235_v39 = vld [vmem:[%s787_s6 + $0xa0] sm:$0xff]  ;;  %v393_v41 = vadd.f32 %v361_v21, %v295_v28  ;;  %v297_v42 = vadd.f32 %v265_v30, %v199_v29  ;;  %v364_v43 = vmul.f32 %v810_v14, %v331_v26  ;;  %v170_v45 = vld [vmem:[%s787_s6 + $0x98] sm:$0xff]  ;;  %v201_v48 = vmul.f32 %v791_v1, %v168_v31  ;;  %p641_p1 = por %p640_p0, %p639_p13 }
  0x32   : > { %v333_v44 = vld [vmem:[%s787_s6 + $0xb0] sm:$0xff]  ;;  %v394_v46 = vadd.f32 %v362_v23, %v296_v33  ;;  %v298_v47 = vadd.f32 %v266_v36, %v200_v35  ;;  %v267_v49 = vmul.f32 %v799_v8, %v234_v32  ;;  %v236_v50 = vld [vmem:[%s787_s6 + $0xa8] sm:$0xff]  ;;  %v334_v51 = vld [vmem:[%s787_s6 + $0xb8] sm:$0xff]  ;;  %424 = vst [vmem:[%s843_s14] sm:$0xff] %v392_v40  ;;  %v365_v54 = vmul.f32 %v810_v14, %v332_v37 }
  0x33   : > { %v171_v52 = vld [vmem:[%s787_s6 + $0xc0] sm:$0xff]  ;;  %425 = vst [vmem:[%s843_s14 + $0x8] sm:$0xff] %v393_v41  ;;  %v395_v53 = vadd.f32 %v363_v34, %v297_v42  ;;  %v202_v55 = vmul.f32 %v791_v1, %v169_v38  ;;  %v268_v56 = vmul.f32 %v799_v8, %v235_v39  ;;  %v237_v57 = vld [vmem:[%s787_s6 + $0xd0] sm:$0xff]  ;;  %v172_v59 = vld [vmem:[%s787_s6 + $0xc8] sm:$0xff]  ;;  %v366_v62 = vmul.f32 %v810_v14, %v333_v44  ;;  %p642_p2 = pnand %p641_p1, %p635_p12 }
  0x34   : > { %v335_v58 = vld [vmem:[%s787_s6 + $0xe0] sm:$0xff]  ;;  %426 = vst [vmem:[%s843_s14 + $0x10] sm:$0xff] %v394_v46  ;;  %v396_v60 = vadd.f32 %v364_v43, %v298_v47  ;;  %v299_v61 = vadd.f32 %v267_v49, %v201_v48  ;;  %v203_v63 = vmul.f32 %v791_v1, %v170_v45  ;;  %v238_v0 = vld [vmem:[%s787_s6 + $0xd8] sm:$0xff]  ;;  %v336_v2 = vld [vmem:[%s787_s6 + $0xe8] sm:$0xff]  ;;  %v269_v4 = vmul.f32 %v799_v8, %v236_v50 }
  0x35   : > { %427 = vst [vmem:[%s843_s14 + $0x18] sm:$0xff] %v395_v53  ;;  %v300_v3 = vadd.f32 %v268_v56, %v202_v55  ;;  %v367_v5 = vmul.f32 %v810_v14, %v334_v51  ;;  %v204_v6 = vmul.f32 %v791_v1, %v171_v52  ;;  %v173_v7 = vld [vmem:[%s787_s6 + $0xf0] sm:$0xff]  ;;  %v239_v9 = vld [vmem:[%s787_s6 + $0x100] sm:$0xff]  ;;  %v270_v12 = vmul.f32 %v799_v8, %v237_v57  ;;  %v174_v16 = vld [vmem:[%s787_s6 + $0xf8] sm:$0xff] }
  0x36   : > { %v337_v10 = vld [vmem:[%s787_s6 + $0x110] sm:$0xff]  ;;  %428 = vst [vmem:[%s843_s14 + $0x20] sm:$0xff] %v396_v60  ;;  %v397_v11 = vadd.f32 %v365_v54, %v299_v61  ;;  %v368_v13 = vmul.f32 %v810_v14, %v335_v58  ;;  %v205_v15 = vmul.f32 %v791_v1, %v172_v59  ;;  %v240_v17 = vld [vmem:[%s787_s6 + $0x108] sm:$0xff]  ;;  %v301_v19 = vadd.f32 %v269_v4, %v203_v63  ;;  %v338_v22 = vld [vmem:[%s787_s6 + $0x118] sm:$0xff] }
  0x37   : > { %v398_v18 = vadd.f32 %v366_v62, %v300_v3  ;;  %v271_v20 = vmul.f32 %v799_v8, %v238_v0  ;;  %v369_v21 = vmul.f32 %v810_v14, %v336_v2  ;;  %v175_v23 = vld [vmem:[%s787_s6 + $0x120] sm:$0xff]  ;;  %v302_v24 = vadd.f32 %v270_v12, %v204_v6  ;;  %v241_v28 = vld [vmem:[%s787_s6 + $0x130] sm:$0xff]  ;;  %v176_v34 = vld [vmem:[%s787_s6 + $0x128] sm:$0xff] }
  0x38   : > { %429 = vst [vmem:[%s843_s14 + $0x28] sm:$0xff] %v397_v11  ;;  %v206_v25 = vmul.f32 %v791_v1, %v173_v7  ;;  %v272_v26 = vmul.f32 %v799_v8, %v239_v9  ;;  %v370_v27 = vmul.f32 %v810_v14, %v337_v10  ;;  %v339_v29 = vld [vmem:[%s787_s6 + $0x140] sm:$0xff]  ;;  %v399_v30 = vadd.f32 %v367_v5, %v301_v19  ;;  %v242_v35 = vld [vmem:[%s787_s6 + $0x138] sm:$0xff]  ;;  %v340_v36 = vld [vmem:[%s787_s6 + $0x148] sm:$0xff] }
  0x39   : > { %430 = vst [vmem:[%s843_s14 + $0x30] sm:$0xff] %v398_v18  ;;  %v303_v31 = vadd.f32 %v271_v20, %v205_v15  ;;  %v207_v32 = vmul.f32 %v791_v1, %v174_v16  ;;  %v273_v33 = vmul.f32 %v799_v8, %v240_v17  ;;  %v400_v37 = vadd.f32 %v368_v13, %v302_v24  ;;  %v177_v41 = vld [vmem:[%s787_s6 + $0x150] sm:$0xff]  ;;  %v243_v42 = vld [vmem:[%s787_s6 + $0x160] sm:$0xff]  ;;  %v178_v48 = vld [vmem:[%s787_s6 + $0x158] sm:$0xff] }
  0x3a   : > { %v304_v38 = vadd.f32 %v272_v26, %v206_v25  ;;  %v371_v39 = vmul.f32 %v810_v14, %v338_v22  ;;  %v208_v40 = vmul.f32 %v791_v1, %v175_v23  ;;  %431 = vst [vmem:[%s843_s14 + $0x38] sm:$0xff] %v399_v30  ;;  %v274_v45 = vmul.f32 %v799_v8, %v241_v28  ;;  %v341_v47 = vld [vmem:[%s787_s6 + $0x170] sm:$0xff]  ;;  %v244_v49 = vld [vmem:[%s787_s6 + $0x168] sm:$0xff]  ;;  %v342_v54 = vld [vmem:[%s787_s6 + $0x178] sm:$0xff] }
  0x3b   : > { %v401_v43 = vadd.f32 %v369_v21, %v303_v31  ;;  %v305_v44 = vadd.f32 %v273_v33, %v207_v32  ;;  %v372_v46 = vmul.f32 %v810_v14, %v339_v29  ;;  %432 = vst [vmem:[%s843_s14 + $0x40] sm:$0xff] %v400_v37  ;;  %v209_v51 = vmul.f32 %v791_v1, %v176_v34  ;;  %v179_v55 = vld [vmem:[%s787_s6 + $0x180] sm:$0xff]  ;;  %v245_v60 = vld [vmem:[%s787_s6 + $0x190] sm:$0xff]  ;;  %v180_v3 = vld [vmem:[%s787_s6 + $0x188] sm:$0xff] }
  0x3c   : > { %v402_v50 = vadd.f32 %v370_v27, %v304_v38  ;;  %v275_v52 = vmul.f32 %v799_v8, %v242_v35  ;;  %v373_v53 = vmul.f32 %v810_v14, %v340_v36  ;;  %v306_v57 = vadd.f32 %v274_v45, %v208_v40  ;;  %v343_v61 = vld [vmem:[%s787_s6 + $0x1a0] sm:$0xff]  ;;  %v246_v4 = vld [vmem:[%s787_s6 + $0x198] sm:$0xff]  ;;  %v344_v5 = vld [vmem:[%s787_s6 + $0x1a8] sm:$0xff] }
  0x3d   : > { %433 = vst [vmem:[%s843_s14 + $0x48] sm:$0xff] %v401_v43  ;;  %v403_v56 = vadd.f32 %v371_v39, %v305_v44  ;;  %v210_v58 = vmul.f32 %v791_v1, %v177_v41  ;;  %v276_v59 = vmul.f32 %v799_v8, %v243_v42  ;;  %v374_v63 = vmul.f32 %v810_v14, %v341_v47  ;;  %v181_v11 = vld [vmem:[%s787_s6 + $0x1b0] sm:$0xff]  ;;  %v247_v12 = vld [vmem:[%s787_s6 + $0x1c0] sm:$0xff]  ;;  %v182_v19 = vld [vmem:[%s787_s6 + $0x1b8] sm:$0xff] }
  0x3e   : > { %434 = vst [vmem:[%s843_s14 + $0x50] sm:$0xff] %v402_v50  ;;  %v307_v62 = vadd.f32 %v275_v52, %v209_v51  ;;  %v211_v0 = vmul.f32 %v791_v1, %v178_v48  ;;  %v277_v2 = vmul.f32 %v799_v8, %v244_v49  ;;  %v404_v6 = vadd.f32 %v372_v46, %v306_v57  ;;  %v345_v18 = vld [vmem:[%s787_s6 + $0x1d0] sm:$0xff]  ;;  %v248_v20 = vld [vmem:[%s787_s6 + $0x1c8] sm:$0xff]  ;;  %v346_v25 = vld [vmem:[%s787_s6 + $0x1d8] sm:$0xff] }
  0x3f   : > { %435 = vst [vmem:[%s843_s14 + $0x58] sm:$0xff] %v403_v56  ;;  %v308_v7 = vadd.f32 %v276_v59, %v210_v58  ;;  %v375_v9 = vmul.f32 %v810_v14, %v342_v54  ;;  %v212_v10 = vmul.f32 %v791_v1, %v179_v55  ;;  %v278_v16 = vmul.f32 %v799_v8, %v245_v60  ;;  %v183_v26 = vld [vmem:[%s787_s6 + $0x1e0] sm:$0xff]  ;;  %v249_v31 = vld [vmem:[%s787_s6 + $0x1f0] sm:$0xff]  ;;  %v184_v37 = vld [vmem:[%s787_s6 + $0x1e8] sm:$0xff] }
  0x40   : > { %v405_v13 = vadd.f32 %v373_v53, %v307_v62  ;;  %v309_v15 = vadd.f32 %v277_v2, %v211_v0  ;;  %v376_v17 = vmul.f32 %v810_v14, %v343_v61  ;;  %436 = vst [vmem:[%s843_s14 + $0x60] sm:$0xff] %v404_v6  ;;  %v213_v22 = vmul.f32 %v791_v1, %v180_v3  ;;  %v347_v32 = vld [vmem:[%s787_s6 + $0x200] sm:$0xff]  ;;  %v250_v38 = vld [vmem:[%s787_s6 + $0x1f8] sm:$0xff]  ;;  %v348_v39 = vld [vmem:[%s787_s6 + $0x208] sm:$0xff] }
  0x41   : > { %v406_v21 = vadd.f32 %v374_v63, %v308_v7  ;;  %v279_v23 = vmul.f32 %v799_v8, %v246_v4  ;;  %v377_v24 = vmul.f32 %v810_v14, %v344_v5  ;;  %v310_v28 = vadd.f32 %v278_v16, %v212_v10  ;;  %v185_v44 = vld [vmem:[%s787_s6 + $0x210] sm:$0xff]  ;;  %v251_v45 = vld [vmem:[%s787_s6 + $0x220] sm:$0xff]  ;;  %v186_v51 = vld [vmem:[%s787_s6 + $0x218] sm:$0xff] }
  0x42   : > { %437 = vst [vmem:[%s843_s14 + $0x68] sm:$0xff] %v405_v13  ;;  %v407_v27 = vadd.f32 %v375_v9, %v309_v15  ;;  %v214_v29 = vmul.f32 %v791_v1, %v181_v11  ;;  %v280_v30 = vmul.f32 %v799_v8, %v247_v12  ;;  %v378_v34 = vmul.f32 %v810_v14, %v345_v18  ;;  %v349_v50 = vld [vmem:[%s787_s6 + $0x230] sm:$0xff]  ;;  %v252_v52 = vld [vmem:[%s787_s6 + $0x228] sm:$0xff]  ;;  %v350_v57 = vld [vmem:[%s787_s6 + $0x238] sm:$0xff] }
  0x43   : > { %438 = vst [vmem:[%s843_s14 + $0x70] sm:$0xff] %v406_v21  ;;  %v311_v33 = vadd.f32 %v279_v23, %v213_v22  ;;  %v215_v35 = vmul.f32 %v791_v1, %v182_v19  ;;  %v281_v36 = vmul.f32 %v799_v8, %v248_v20  ;;  %v408_v40 = vadd.f32 %v376_v17, %v310_v28  ;;  %v187_v58 = vld [vmem:[%s787_s6 + $0x240] sm:$0xff]  ;;  %v253_v63 = vld [vmem:[%s787_s6 + $0x250] sm:$0xff]  ;;  %v188_v6 = vld [vmem:[%s787_s6 + $0x248] sm:$0xff] }
  0x44   : > { %439 = vst [vmem:[%s843_s14 + $0x78] sm:$0xff] %v407_v27  ;;  %v312_v41 = vadd.f32 %v280_v30, %v214_v29  ;;  %v379_v42 = vmul.f32 %v810_v14, %v346_v25  ;;  %v216_v43 = vmul.f32 %v791_v1, %v183_v26  ;;  %v282_v48 = vmul.f32 %v799_v8, %v249_v31  ;;  %v351_v0 = vld [vmem:[%s787_s6 + $0x260] sm:$0xff]  ;;  %v254_v7 = vld [vmem:[%s787_s6 + $0x258] sm:$0xff]  ;;  %v352_v9 = vld [vmem:[%s787_s6 + $0x268] sm:$0xff] }
  0x45   : > { %v409_v46 = vadd.f32 %v377_v24, %v311_v33  ;;  %v313_v47 = vadd.f32 %v281_v36, %v215_v35  ;;  %v380_v49 = vmul.f32 %v810_v14, %v347_v32  ;;  %440 = vst [vmem:[%s843_s14 + $0x80] sm:$0xff] %v408_v40  ;;  %v217_v54 = vmul.f32 %v791_v1, %v184_v37  ;;  %v189_v15 = vld [vmem:[%s787_s6 + $0x270] sm:$0xff]  ;;  %v255_v16 = vld [vmem:[%s787_s6 + $0x280] sm:$0xff]  ;;  %v190_v22 = vld [vmem:[%s787_s6 + $0x278] sm:$0xff] }
  0x46   : > { %v410_v53 = vadd.f32 %v378_v34, %v312_v41  ;;  %v283_v55 = vmul.f32 %v799_v8, %v250_v38  ;;  %v381_v56 = vmul.f32 %v810_v14, %v348_v39  ;;  %v314_v60 = vadd.f32 %v282_v48, %v216_v43  ;;  %v353_v21 = vld [vmem:[%s787_s6 + $0x290] sm:$0xff]  ;;  %v256_v23 = vld [vmem:[%s787_s6 + $0x288] sm:$0xff]  ;;  %v354_v28 = vld [vmem:[%s787_s6 + $0x298] sm:$0xff] }
  0x47   : > { %441 = vst [vmem:[%s843_s14 + $0x88] sm:$0xff] %v409_v46  ;;  %v411_v59 = vadd.f32 %v379_v42, %v313_v47  ;;  %v218_v61 = vmul.f32 %v791_v1, %v185_v44  ;;  %v284_v62 = vmul.f32 %v799_v8, %v251_v45  ;;  %v382_v3 = vmul.f32 %v810_v14, %v349_v50  ;;  %v191_v29 = vld [vmem:[%s787_s6 + $0x2a0] sm:$0xff]  ;;  %v257_v34 = vld [vmem:[%s787_s6 + $0x2b0] sm:$0xff]  ;;  %v192_v40 = vld [vmem:[%s787_s6 + $0x2a8] sm:$0xff] }
  0x48   : > { %442 = vst [vmem:[%s843_s14 + $0x90] sm:$0xff] %v410_v53  ;;  %v315_v2 = vadd.f32 %v283_v55, %v217_v54  ;;  %v219_v4 = vmul.f32 %v791_v1, %v186_v51  ;;  %v285_v5 = vmul.f32 %v799_v8, %v252_v52  ;;  %v412_v10 = vadd.f32 %v380_v49, %v314_v60  ;;  %v355_v35 = vld [vmem:[%s787_s6 + $0x2c0] sm:$0xff]  ;;  %v258_v41 = vld [vmem:[%s787_s6 + $0x2b8] sm:$0xff]  ;;  %v356_v42 = vld [vmem:[%s787_s6 + $0x2c8] sm:$0xff] }
  0x49   : > { %443 = vst [vmem:[%s843_s14 + $0x98] sm:$0xff] %v411_v59  ;;  %v316_v11 = vadd.f32 %v284_v62, %v218_v61  ;;  %v383_v12 = vmul.f32 %v810_v14, %v350_v57  ;;  %v220_v13 = vmul.f32 %v791_v1, %v187_v58  ;;  %v286_v19 = vmul.f32 %v799_v8, %v253_v63  ;;  %v193_v47 = vld [vmem:[%s787_s6 + $0x2d0] sm:$0xff]  ;;  %v259_v48 = vld [vmem:[%s787_s6 + $0x2e0] sm:$0xff]  ;;  %v194_v54 = vld [vmem:[%s787_s6 + $0x2d8] sm:$0xff] }
  0x4a   : > { %v413_v17 = vadd.f32 %v381_v56, %v315_v2  ;;  %v317_v18 = vadd.f32 %v285_v5, %v219_v4  ;;  %v384_v20 = vmul.f32 %v810_v14, %v351_v0  ;;  %444 = vst [vmem:[%s843_s14 + $0xa0] sm:$0xff] %v412_v10  ;;  %v221_v25 = vmul.f32 %v791_v1, %v188_v6  ;;  %v357_v53 = vld [vmem:[%s787_s6 + $0x2f0] sm:$0xff]  ;;  %v260_v55 = vld [vmem:[%s787_s6 + $0x2e8] sm:$0xff]  ;;  %v358_v60 = vld [vmem:[%s787_s6 + $0x2f8] sm:$0xff] }
  0x4b   : > { %v414_v24 = vadd.f32 %v382_v3, %v316_v11  ;;  %v287_v26 = vmul.f32 %v799_v8, %v254_v7  ;;  %v385_v27 = vmul.f32 %v810_v14, %v352_v9  ;;  %v318_v31 = vadd.f32 %v286_v19, %v220_v13 }
  0x4c   : > { %445 = vst [vmem:[%s843_s14 + $0xa8] sm:$0xff] %v413_v17  ;;  %v415_v30 = vadd.f32 %v383_v12, %v317_v18  ;;  %v222_v32 = vmul.f32 %v791_v1, %v189_v15  ;;  %v288_v33 = vmul.f32 %v799_v8, %v255_v16  ;;  %v386_v37 = vmul.f32 %v810_v14, %v353_v21 }
  0x4d   : > { %446 = vst [vmem:[%s843_s14 + $0xb0] sm:$0xff] %v414_v24  ;;  %v319_v36 = vadd.f32 %v287_v26, %v221_v25  ;;  %v223_v38 = vmul.f32 %v791_v1, %v190_v22  ;;  %v289_v39 = vmul.f32 %v799_v8, %v256_v23  ;;  %v416_v43 = vadd.f32 %v384_v20, %v318_v31 }
  0x4e   : > { %447 = vst [vmem:[%s843_s14 + $0xb8] sm:$0xff] %v415_v30  ;;  %v320_v44 = vadd.f32 %v288_v33, %v222_v32  ;;  %v387_v45 = vmul.f32 %v810_v14, %v354_v28  ;;  %v224_v46 = vmul.f32 %v791_v1, %v191_v29  ;;  %v290_v51 = vmul.f32 %v799_v8, %v257_v34 }
  0x4f   : > { %v417_v49 = vadd.f32 %v385_v27, %v319_v36  ;;  %v321_v50 = vadd.f32 %v289_v39, %v223_v38  ;;  %v388_v52 = vmul.f32 %v810_v14, %v355_v35  ;;  %448 = vst [vmem:[%s843_s14 + $0xc0] sm:$0xff] %v416_v43  ;;  %v225_v57 = vmul.f32 %v791_v1, %v192_v40 }
  0x50   : > { %v418_v56 = vadd.f32 %v386_v37, %v320_v44  ;;  %v291_v58 = vmul.f32 %v799_v8, %v258_v41  ;;  %v389_v59 = vmul.f32 %v810_v14, %v356_v42  ;;  %v322_v62 = vadd.f32 %v290_v51, %v224_v46 }
  0x51   : > { %449 = vst [vmem:[%s843_s14 + $0xc8] sm:$0xff] %v417_v49  ;;  %v419_v61 = vadd.f32 %v387_v45, %v321_v50  ;;  %v226_v63 = vmul.f32 %v791_v1, %v193_v47  ;;  %v292_v0 = vmul.f32 %v799_v8, %v259_v48  ;;  %v390_v3 = vmul.f32 %v810_v14, %v357_v53 }
  0x52   : > { %450 = vst [vmem:[%s843_s14 + $0xd0] sm:$0xff] %v418_v56  ;;  %v323_v2 = vadd.f32 %v291_v58, %v225_v57  ;;  %v227_v4 = vmul.f32 %v791_v1, %v194_v54  ;;  %v293_v5 = vmul.f32 %v799_v8, %v260_v55  ;;  %v420_v6 = vadd.f32 %v388_v52, %v322_v62 }
  0x53   : > { %451 = vst [vmem:[%s843_s14 + $0xd8] sm:$0xff] %v419_v61  ;;  %v324_v7 = vadd.f32 %v292_v0, %v226_v63  ;;  %v391_v9 = vmul.f32 %v810_v14, %v358_v60 }
  0x54   : > { %v421_v10 = vadd.f32 %v389_v59, %v323_v2  ;;  %v325_v11 = vadd.f32 %v293_v5, %v227_v4  ;;  %452 = vst [vmem:[%s843_s14 + $0xe0] sm:$0xff] %v420_v6 }
  0x55   : > { %v422_v12 = vadd.f32 %v390_v3, %v324_v7 }
  0x56   : > { %453 = vst [vmem:[%s843_s14 + $0xe8] sm:$0xff] %v421_v10  ;;  %v423_v1 = vadd.f32 %v391_v9, %v325_v11 }
  0x57   : > { %454 = vst [vmem:[%s843_s14 + $0xf0] sm:$0xff] %v422_v12 }
  0x58   : > { %455 = vst [vmem:[%s843_s14 + $0xf8] sm:$0xff] %v423_v1 }
  0x59   : > { %645 = shalt.err (!%p642_p2)
}
  0x5a   : > { %s646_s28 = scalar_lea.hbm %s1029_s23, 4096  ;;  %s650_s3 = scalar_lea.hbm %s1080_s2, 16384 }
  0x5b   : > { %p647_p3 = scmp.ne.s32.totalorder %s1029_s23, %s646_s28  ;;  %p651_p8 = scmp.lt.s32.totalorder %s1029_s23, %s1080_s2 }
  0x5c   : > { %p652_p11 = scmp.lt.s32.totalorder %s650_s3, %s646_s28 }
  0x5d   : > { %p648_p4 = pnand %p647_p3, %p755_p5 }
  0x5e   : > { %p653_p9 = por %p652_p11, %p651_p8 }
  0x5f   : > { %p649_p7 = pneg %p648_p4 }
  0x61   : > { %p654_p10 = pnand %p653_p9, %p649_p7 }
  0x63   : > { %657 = shalt.err (!%p654_p10)
}
  0x64   : > { %s700_s6 = smov 256   ;;  %s701_s7 = smov 16  }
  0x65   : > { %569 = dma.vmem_to_hbm [thread:$0]  (%p755_p5), %s1031_s17, 4096, %s1029_s23, %s1038_s13, %s700_s6, %s700_s6, %s701_s7  }
  0x66 PF: > { %p581_p12 = scmp.ge.s32.totalorder %s696_s12, 2  ;;  %s486_s8 = sand.u32 1, %s684_s9  }
  0x67   : > { %s487_s14 = scalar_lea.sflag [#allocation3], %s486_s8 }
  0x68   : > { %p576_p13 = pnand %p581_p12, %p759_p6 }
  0x6a   : > { %p577_p0 = pneg %p576_p13 }
  0x6c   : > { %679 = dma.done.wait (%p577_p0), %s487_s14, 4096  }
  0x6d   : > { %681 = vsyncadd (%p577_p0), %s487_s14, 4294963200  ;;  %p13_p1 = scmp.ge.s32.totalorder %s742_s15, 6   ;;  %s1084_s9 = smov %s688_s10 }
  0x6e   : > { %s1085_s10 = smov %s692_s11  ;;  %s1086_s11 = smov %s753_s18 }
  0x6f   : > { %s1087_s12 = smov %s742_s15  ;;  %15 = sbr.rel (!%p13_p1) target bundleno = 4 (0x4), region = 68 }
  0x74   :  { %492 = vsyncpa [#allocation3], 1 }
  0x75   :  { %494 = vsyncpa [#allocation3 + $0x1], 1 }
  0x76   :  { %495 = vsyncpa [#allocation4], 1 }
  0x77   :  { %497 = vsyncpa [#allocation4 + $0x1], 1 }

// kernel: semantic_attention.2
= control target key start
LH: loop header
LB: loop body
LE: loop exit
PB: predicated region body
PF: predicated region fallthrough
CT: control target
= control target key end

     0   :  { %s1414_s12 = smov 0   ;;  %s1416_s13 = smov 0   ;;  %s1790_s0 = inlined_call_operand.vmem [shape: f32[512,768], index: 0, kind: input, shape index: {}]   ;;  %s1791_s1 = inlined_call_operand.vmem [shape: bf16[256,128], index: 1, kind: input, shape index: {}]   ;;  %s1792_s2 = inlined_call_operand.vmem [shape: f32[1,128], index: 2, kind: input, shape index: {}]   ;;  %s1793_s3 = inlined_call_operand.vmem [shape: f32[2,3,128], index: 3, kind: output, shape index: {}]  }
   0x1   :  { %s1418_s14 = smov 0   ;;  %s1420_s15 = smov 0  }
   0x2   :  { %s1422_s16 = smov 0  }
   0x3 LB: > { %s22_s17 = sadd.s32 1, %s1383_s14  ;;  %s25_s18 = sadd.s32 1, %s1387_s15  ;;  %s1391_s16 = sphi %s1422_s16, %s13_s16   ;;  %s1387_s15 = sphi %s1420_s15, %s1797_s15   ;;  %s1383_s14 = sphi %s1418_s14, %s1796_s14   ;;  %s1379_s13 = sphi %s1416_s13, %s1795_s13   ;;  %s1375_s12 = sphi %s1414_s12, %s1794_s12  }
   0x4   : > { %p23_p0 = scmp.ge.s32.totalorder %s22_s17, 2  ;;  %p966_p1 = scmp.ge.s32.totalorder %s1391_s16, 1 }
   0x5   : > { %p159_p2 = scmp.lt.s32.totalorder %s1391_s16, 5 }
   0x6   : > { %s1799_s17 = smov (%p23_p0, %s22_s17), 0  ;;  %s1801_s18 = smov (!%p23_p0, %s25_s18), %s1387_s15 }
   0x7   : > { %p160_p3 = pnand %p966_p1, %p159_p2  ;;  %p27_p4 = scmp.ge.s32.totalorder %s1801_s18, 2 }
   0x8   : > { %s967_s19 = sshll.u32 (!%p160_p3), %s1379_s13, 1  ;;  %p196_p5 = scmp.lt.s32.totalorder (!%p160_p3), %s1379_s13, 1 }
   0x9   : > { %s1803_s18 = smov (%p27_p4, %s1801_s18), 0  ;;  %163 = sbr.rel (%p160_p3) target bundleno = 379 (0x17b), region = 32 }
   0xa   : > { %s186_s20 = sadd.s32 (!%p160_p3), %s1375_s12, %s967_s19  ;;  %p971_p7 = scmp.ne.s32.totalorder (!%p160_p3), %s1375_s12, 0 }
   0xb   : > { %s968_s21 = sshll.u32 (!%p160_p3), %s186_s20, 4 }
   0xc   : > { %p188_p6 = scmp.lt.s32.totalorder (!%p160_p3), %s968_s21, 63 }
   0xe   : > { %s1805_s13 = smov (!%p196_p5, %s1379_s13), 1  ;;  %s1807_s21 = smov (!%p188_p6, %s968_s21), 63 }
   0xf   : > { %s970_s22 = sshll.u32 %s1805_s13, 2  ;;  %s1199_s23 = smul.u32 48, %s1807_s21 }
  0x10   : > { %s1447_s26 = scalar_lea.vmem %s1793_s3, %s970_s22  ;;  %204 = sbr.rel (%p971_p7) target bundleno = 23 (0x17), region = 36 }
  0x11   : > { %s1452_s29 = scalar_lea.vmem %s1790_s0, %s1199_s23 }
  0x15   : > { %v1393_v0 = vmov 0.0  }
  0x16   : > { %205 = vst [vmem:[%s1447_s26] sm:$0x7] %v1393_v0 }
  0x17 PF: > { %v1458_v1 = vld [vmem:[%s1791_s1 + $0x78] sm:$0xff]   ;;  %v1470_v3 = vld [vmem:[%s1791_s1 + $0x70] sm:$0xff]   ;;  %v1484_v5 = vld [vmem:[%s1791_s1 + $0x68] sm:$0xff]  }
  0x18   : > { %v1463_v2 = vld [vmem:[%s1791_s1 + $0x38] sm:$0xff]   ;;  %991 = vmatprep.subr.bf16.mxu0 %v1458_v1  ;;  %1183 = vmatprep.subr.bf16.mxu1 %v1458_v1  ;;  %v1477_v4 = vld [vmem:[%s1791_s1 + $0x30] sm:$0xff]   ;;  %v1491_v6 = vld [vmem:[%s1791_s1 + $0x28] sm:$0xff]  }
  0x19   : > { %992 = vmatpush3.bf16.msra.mxu0 %v1463_v2  ;;  %1191 = vmatpush3.bf16.msra.mxu1 %v1463_v2  ;;  %v1498_v7 = vld [vmem:[%s1791_s1 + $0x60] sm:$0xff]   ;;  %v1512_v9 = vld [vmem:[%s1791_s1 + $0x58] sm:$0xff]   ;;  %v1524_v11 = vld [vmem:[%s1791_s1 + $0x50] sm:$0xff]  }
  0x1a   : > { %993 = vmatprep.subr.bf16.mxu0 %v1470_v3  ;;  %1184 = vmatprep.subr.bf16.mxu1 %v1470_v3  ;;  %v1505_v8 = vld [vmem:[%s1791_s1 + $0x20] sm:$0xff]   ;;  %v1517_v10 = vld [vmem:[%s1791_s1 + $0x18] sm:$0xff]   ;;  %v240_v12 = vld [vmem:[%s1452_s29 + $0x8] sm:$0xff] }
  0x1b   : > { %v242_v13 = vld [vmem:[%s1452_s29 + $0x38] sm:$0xff]  ;;  %v256_v14 = vld [vmem:[%s1452_s29 + $0x188] sm:$0xff]  ;;  %v1537_v18 = vld [vmem:[%s1791_s1 + $0x10] sm:$0xff]  }
  0x1c   : > { %v272_v15 = vpack.c.bf16 %v242_v13, %v240_v12  ;;  %v258_v16 = vld [vmem:[%s1452_s29 + $0x1b8] sm:$0xff]  ;;  %v1544_v19 = vld [vmem:[%s1791_s1 + $0x48] sm:$0xff]   ;;  %v1558_v21 = vld [vmem:[%s1791_s1 + $0x40] sm:$0xff]  }
  0x1d   : > { %994 = vmatpush3.bf16.msra.mxu0 %v1477_v4  ;;  %1192 = vmatpush3.bf16.msra.mxu1 %v1477_v4  ;;  %v280_v17 = vpack.c.bf16 %v258_v16, %v256_v14  ;;  %v1551_v20 = vld [vmem:[%s1791_s1 + $0x8] sm:$0xff]   ;;  %v1563_v22 = vld [vmem:[%s1791_s1] sm:$0xff]   ;;  %v241_v24 = vld [vmem:[%s1452_s29 + $0x30] sm:$0xff] }
  0x1e   : > { %995 = vmatprep.subr.bf16.mxu0 %v1484_v5  ;;  %1185 = vmatprep.subr.bf16.mxu1 %v1484_v5  ;;  %v239_v23 = vld [vmem:[%s1452_s29] sm:$0xff]  ;;  %v257_v26 = vld [vmem:[%s1452_s29 + $0x1b0] sm:$0xff]  ;;  %v244_v27 = vld [vmem:[%s1452_s29 + $0x68] sm:$0xff] }
  0x1f   : > { %421 = vmatprep.mubr.bf16.mxu0 %v272_v15  ;;  %453 = vmatprep.mubr.bf16.mxu1 %v280_v17  ;;  %v255_v25 = vld [vmem:[%s1452_s29 + $0x180] sm:$0xff]  ;;  %v271_v28 = vpack.c.bf16 %v241_v24, %v239_v23  ;;  %v246_v30 = vld [vmem:[%s1452_s29 + $0x98] sm:$0xff]  ;;  %v260_v31 = vld [vmem:[%s1452_s29 + $0x1e8] sm:$0xff] }
  0x20   : > { %v279_v29 = vpack.c.bf16 %v257_v26, %v255_v25  ;;  %v262_v32 = vld [vmem:[%s1452_s29 + $0x218] sm:$0xff]  ;;  %v274_v33 = vpack.c.bf16 %v246_v30, %v244_v27  ;;  %v243_v35 = vld [vmem:[%s1452_s29 + $0x60] sm:$0xff]  ;;  %v245_v36 = vld [vmem:[%s1452_s29 + $0x90] sm:$0xff] }
  0x21   : > { %996 = vmatpush3.bf16.msra.mxu0 %v1491_v6  ;;  %1193 = vmatpush3.bf16.msra.mxu1 %v1491_v6  ;;  %v282_v34 = vpack.c.bf16 %v262_v32, %v260_v31  ;;  %v259_v37 = vld [vmem:[%s1452_s29 + $0x1e0] sm:$0xff]  ;;  %v261_v38 = vld [vmem:[%s1452_s29 + $0x210] sm:$0xff]  ;;  %v248_v39 = vld [vmem:[%s1452_s29 + $0xc8] sm:$0xff]  ;;  %v273_v40 = vpack.c.bf16 %v245_v36, %v243_v35 }
  0x22   : > { %997 = vmatprep.subr.bf16.mxu0 %v1498_v7  ;;  %1186 = vmatprep.subr.bf16.mxu1 %v1498_v7  ;;  %v281_v41 = vpack.c.bf16 %v261_v38, %v259_v37  ;;  %v250_v42 = vld [vmem:[%s1452_s29 + $0xf8] sm:$0xff]  ;;  %v264_v43 = vld [vmem:[%s1452_s29 + $0x248] sm:$0xff]  ;;  %v247_v47 = vld [vmem:[%s1452_s29 + $0xc0] sm:$0xff] }
  0x23   : > { %v266_v44 = vld [vmem:[%s1452_s29 + $0x278] sm:$0xff]  ;;  %v276_v45 = vpack.c.bf16 %v250_v42, %v248_v39  ;;  %v249_v48 = vld [vmem:[%s1452_s29 + $0xf0] sm:$0xff]  ;;  %v263_v49 = vld [vmem:[%s1452_s29 + $0x240] sm:$0xff] }
  0x24   : > { %v284_v46 = vpack.c.bf16 %v266_v44, %v264_v43  ;;  %v265_v50 = vld [vmem:[%s1452_s29 + $0x270] sm:$0xff]  ;;  %v252_v51 = vld [vmem:[%s1452_s29 + $0x128] sm:$0xff]  ;;  %v275_v52 = vpack.c.bf16 %v249_v48, %v247_v47  ;;  %v254_v54 = vld [vmem:[%s1452_s29 + $0x158] sm:$0xff] }
  0x25   : > { %998 = vmatpush3.bf16.msra.mxu0 %v1505_v8  ;;  %1194 = vmatpush3.bf16.msra.mxu1 %v1505_v8  ;;  %v283_v53 = vpack.c.bf16 %v265_v50, %v263_v49  ;;  %v268_v55 = vld [vmem:[%s1452_s29 + $0x2a8] sm:$0xff]  ;;  %v270_v56 = vld [vmem:[%s1452_s29 + $0x2d8] sm:$0xff]  ;;  %v278_v57 = vpack.c.bf16 %v254_v54, %v252_v51  ;;  %v251_v59 = vld [vmem:[%s1452_s29 + $0x120] sm:$0xff] }
  0x26   : > { %999 = vmatprep.subr.bf16.mxu0 %v1512_v9  ;;  %1187 = vmatprep.subr.bf16.mxu1 %v1512_v9  ;;  %v286_v58 = vpack.c.bf16 %v270_v56, %v268_v55  ;;  %v253_v60 = vld [vmem:[%s1452_s29 + $0x150] sm:$0xff]  ;;  %v267_v61 = vld [vmem:[%s1452_s29 + $0x2a0] sm:$0xff]  ;;  %v527_v63 = vld [vmem:[%s1452_s29 + $0x18] sm:$0xff] }
  0x27   : > { %v269_v62 = vld [vmem:[%s1452_s29 + $0x2d0] sm:$0xff]  ;;  %v277_v0 = vpack.c.bf16 %v253_v60, %v251_v59  ;;  %v533_v12 = vld [vmem:[%s1452_s29 + $0xa8] sm:$0xff]  ;;  %v718_v14 = vld [vmem:[%s1452_s29 + $0xb8] sm:$0xff] }
  0x28   : > { %v716_v13 = vld [vmem:[%s1452_s29 + $0x88] sm:$0xff]  ;;  %v717_v23 = vld [vmem:[%s1452_s29 + $0xb0] sm:$0xff]  ;;  %v535_v24 = vld [vmem:[%s1452_s29 + $0xd8] sm:$0xff] }
  0x29   : > { %1000 = vmatpush3.bf16.msra.mxu0 %v1517_v10  ;;  %1195 = vmatpush3.bf16.msra.mxu1 %v1517_v10  ;;  %v537_v25 = vld [vmem:[%s1452_s29 + $0x108] sm:$0xff]  ;;  %v534_v31 = vld [vmem:[%s1452_s29 + $0xd0] sm:$0xff]  ;;  %v536_v32 = vld [vmem:[%s1452_s29 + $0x100] sm:$0xff] }
  0x2a   : > { %1001 = vmatprep.subr.bf16.mxu0 %v1524_v11  ;;  %1188 = vmatprep.subr.bf16.mxu1 %v1524_v11  ;;  %v720_v26 = vld [vmem:[%s1452_s29 + $0xe8] sm:$0xff]  ;;  %v539_v35 = vld [vmem:[%s1452_s29 + $0x138] sm:$0xff]  ;;  %v562_v39 = vpack.c.bf16 %v536_v32, %v534_v31  ;;  %v538_v43 = vld [vmem:[%s1452_s29 + $0x130] sm:$0xff] }
  0x2b   : > { %v541_v36 = vld [vmem:[%s1452_s29 + $0x168] sm:$0xff]  ;;  %v726_v38 = vld [vmem:[%s1452_s29 + $0x178] sm:$0xff]  ;;  %v540_v44 = vld [vmem:[%s1452_s29 + $0x160] sm:$0xff] }
  0x2c   : > { %v724_v37 = vld [vmem:[%s1452_s29 + $0x148] sm:$0xff]  ;;  %v543_v47 = vld [vmem:[%s1452_s29 + $0x198] sm:$0xff]  ;;  %v564_v51 = vpack.c.bf16 %v540_v44, %v538_v43  ;;  %v542_v55 = vld [vmem:[%s1452_s29 + $0x190] sm:$0xff] }
  0x2d   : > { %1002 = vmatpush3.bf16.msra.mxu0 %v1537_v18  ;;  %1196 = vmatpush3.bf16.msra.mxu1 %v1537_v18  ;;  %v750_v42 = vpack.c.bf16 %v726_v38, %v724_v37  ;;  %v545_v48 = vld [vmem:[%s1452_s29 + $0x1c8] sm:$0xff]  ;;  %v730_v50 = vld [vmem:[%s1452_s29 + $0x1d8] sm:$0xff]  ;;  %v544_v56 = vld [vmem:[%s1452_s29 + $0x1c0] sm:$0xff] }
  0x2e   : > { %1003 = vmatprep.subr.bf16.mxu0 %v1544_v19  ;;  %1189 = vmatprep.subr.bf16.mxu1 %v1544_v19  ;;  %v728_v49 = vld [vmem:[%s1452_s29 + $0x1a8] sm:$0xff]  ;;  %v547_v59 = vld [vmem:[%s1452_s29 + $0x1f8] sm:$0xff] }
  0x2f   : > { %v752_v54 = vpack.c.bf16 %v730_v50, %v728_v49  ;;  %v549_v60 = vld [vmem:[%s1452_s29 + $0x228] sm:$0xff] }
  0x31   : > { %1004 = vmatpush3.bf16.msra.mxu0 %v1551_v20  ;;  %1197 = vmatpush3.bf16.msra.mxu1 %v1551_v20 }
  0x32   : > { %1005 = vmatprep.subr.bf16.mxu0 %v1558_v21  ;;  %1190 = vmatprep.subr.bf16.mxu1 %v1558_v21 }
  0x35   : > { %1006 = vmatpush3.bf16.msra.mxu0 %v1563_v22  ;;  %1198 = vmatpush3.bf16.msra.mxu1 %v1563_v22 }
  0x36   : > { %1055 = vmatprep.subr.bf16.mxu1 %v1458_v1  ;;  %1119 = vmatprep.subr.bf16.mxu0 %v1458_v1  ;;  %v285_v1 = vpack.c.bf16 %v269_v62, %v267_v61  ;;  %v732_v61 = vld [vmem:[%s1452_s29 + $0x208] sm:$0xff]  ;;  %v734_v62 = vld [vmem:[%s1452_s29 + $0x238] sm:$0xff] }
  0x38   : > { %422 = vmatmul.mubr.bf16.vlgmr.msra.gmra.mxu0 %v271_v28  ;;  %454 = vmatmul.mubr.bf16.vlgmr.msra.gmra.mxu1 %v279_v29  ;;  %v563_v29 = vpack.c.bf16 %v537_v25, %v535_v24 }
  0x39   : > { %1056 = vmatpush3.bf16.msra.mxu1 %v1463_v2  ;;  %1120 = vmatpush3.bf16.msra.mxu0 %v1463_v2  ;;  %v529_v2 = vld [vmem:[%s1452_s29 + $0x48] sm:$0xff] }
  0x3a   : > { %1057 = vmatprep.subr.bf16.mxu1 %v1470_v3  ;;  %1121 = vmatprep.subr.bf16.mxu0 %v1470_v3  ;;  %v712_v3 = vld [vmem:[%s1452_s29 + $0x28] sm:$0xff] }
  0x3b   : > { %429 = vmatprep.mubr.bf16.mxu0 %v274_v33  ;;  %461 = vmatprep.mubr.bf16.mxu1 %v282_v34  ;;  %v719_v33 = vld [vmem:[%s1452_s29 + $0xe0] sm:$0xff]  ;;  %v721_v34 = vld [vmem:[%s1452_s29 + $0x110] sm:$0xff] }
  0x3d   : > { %1058 = vmatpush3.bf16.msra.mxu1 %v1477_v4  ;;  %1122 = vmatpush3.bf16.msra.mxu0 %v1477_v4  ;;  %v714_v4 = vld [vmem:[%s1452_s29 + $0x58] sm:$0xff] }
  0x3e   : > { %1059 = vmatprep.subr.bf16.mxu1 %v1484_v5  ;;  %1123 = vmatprep.subr.bf16.mxu0 %v1484_v5  ;;  %v559_v5 = vpack.c.bf16 %v529_v2, %v527_v63  ;;  %v566_v63 = vpack.c.bf16 %v544_v56, %v542_v55  ;;  %v754_v2 = vpack.c.bf16 %v734_v62, %v732_v61 }
  0x40   : > { %430 = vmatmul.mubr.bf16.gmra.mxu0 %v273_v40  ;;  %462 = vmatmul.mubr.bf16.gmra.mxu1 %v281_v41  ;;  %v747_v40 = vpack.c.bf16 %v721_v34, %v719_v33  ;;  %v565_v41 = vpack.c.bf16 %v541_v36, %v539_v35 }
  0x41   : > { %1060 = vmatpush3.bf16.msra.mxu1 %v1491_v6  ;;  %1124 = vmatpush3.bf16.msra.mxu0 %v1491_v6  ;;  %v744_v6 = vpack.c.bf16 %v714_v4, %v712_v3  ;;  %v546_v3 = vld [vmem:[%s1452_s29 + $0x1f0] sm:$0xff]  ;;  %v548_v4 = vld [vmem:[%s1452_s29 + $0x220] sm:$0xff] }
  0x42   : > { %1061 = vmatprep.subr.bf16.mxu1 %v1498_v7  ;;  %1125 = vmatprep.subr.bf16.mxu0 %v1498_v7  ;;  %v526_v7 = vld [vmem:[%s1452_s29 + $0x10] sm:$0xff] }
  0x43   : > { %437 = vmatprep.mubr.bf16.mxu0 %v276_v45  ;;  %469 = vmatprep.mubr.bf16.mxu1 %v284_v46  ;;  %v723_v45 = vld [vmem:[%s1452_s29 + $0x140] sm:$0xff]  ;;  %v725_v46 = vld [vmem:[%s1452_s29 + $0x170] sm:$0xff] }
  0x45   : > { %1062 = vmatpush3.bf16.msra.mxu1 %v1505_v8  ;;  %1126 = vmatpush3.bf16.msra.mxu0 %v1505_v8  ;;  %v528_v8 = vld [vmem:[%s1452_s29 + $0x40] sm:$0xff] }
  0x46   : > { %1063 = vmatprep.subr.bf16.mxu1 %v1512_v9  ;;  %1127 = vmatprep.subr.bf16.mxu0 %v1512_v9  ;;  %v711_v9 = vld [vmem:[%s1452_s29 + $0x20] sm:$0xff]  ;;  %v558_v15 = vpack.c.bf16 %v528_v8, %v526_v7  ;;  %v551_v7 = vld [vmem:[%s1452_s29 + $0x258] sm:$0xff]  ;;  %v553_v8 = vld [vmem:[%s1452_s29 + $0x288] sm:$0xff] }
  0x48   : > { %438 = vmatmul.mubr.bf16.gmra.mxu0 %v275_v52  ;;  %470 = vmatmul.mubr.bf16.gmra.mxu1 %v283_v53  ;;  %v749_v52 = vpack.c.bf16 %v725_v46, %v723_v45  ;;  %v567_v53 = vpack.c.bf16 %v545_v48, %v543_v47 }
  0x49   : > { %1064 = vmatpush3.bf16.msra.mxu1 %v1517_v10  ;;  %1128 = vmatpush3.bf16.msra.mxu0 %v1517_v10  ;;  %v713_v10 = vld [vmem:[%s1452_s29 + $0x50] sm:$0xff] }
  0x4a   : > { %1065 = vmatprep.subr.bf16.mxu1 %v1524_v11  ;;  %1129 = vmatprep.subr.bf16.mxu0 %v1524_v11  ;;  %v531_v11 = vld [vmem:[%s1452_s29 + $0x78] sm:$0xff]  ;;  %v743_v16 = vpack.c.bf16 %v713_v10, %v711_v9  ;;  %v736_v9 = vld [vmem:[%s1452_s29 + $0x268] sm:$0xff] }
  0x4b   : > { %445 = vmatprep.mubr.bf16.mxu0 %v278_v57  ;;  %477 = vmatprep.mubr.bf16.mxu1 %v286_v58  ;;  %v561_v17 = vpack.c.bf16 %v533_v12, %v531_v11  ;;  %v727_v57 = vld [vmem:[%s1452_s29 + $0x1a0] sm:$0xff]  ;;  %v729_v58 = vld [vmem:[%s1452_s29 + $0x1d0] sm:$0xff]  ;;  %v738_v10 = vld [vmem:[%s1452_s29 + $0x298] sm:$0xff]  ;;  %v568_v11 = vpack.c.bf16 %v548_v4, %v546_v3 }
  0x4d   : > { %1066 = vmatpush3.bf16.msra.mxu1 %v1537_v18  ;;  %1130 = vmatpush3.bf16.msra.mxu0 %v1537_v18  ;;  %v746_v18 = vpack.c.bf16 %v718_v14, %v716_v13  ;;  %v571_v13 = vpack.c.bf16 %v553_v8, %v551_v7  ;;  %v756_v14 = vpack.c.bf16 %v738_v10, %v736_v9 }
  0x4e   : > { %1067 = vmatprep.subr.bf16.mxu1 %v1544_v19  ;;  %1131 = vmatprep.subr.bf16.mxu0 %v1544_v19  ;;  %v530_v19 = vld [vmem:[%s1452_s29 + $0x70] sm:$0xff] }
  0x50   : > { %446 = vmatmul.mubr.bf16.gmra.mxu0 %v277_v0  ;;  %478 = vmatmul.mubr.bf16.gmra.mxu1 %v285_v1  ;;  %v751_v0 = vpack.c.bf16 %v729_v58, %v727_v57  ;;  %v569_v1 = vpack.c.bf16 %v549_v60, %v547_v59 }
  0x51   : > { %1068 = vmatpush3.bf16.msra.mxu1 %v1551_v20  ;;  %1132 = vmatpush3.bf16.msra.mxu0 %v1551_v20  ;;  %v532_v20 = vld [vmem:[%s1452_s29 + $0xa0] sm:$0xff] }
  0x52   : > { %1069 = vmatprep.subr.bf16.mxu1 %v1558_v21  ;;  %1133 = vmatprep.subr.bf16.mxu0 %v1558_v21  ;;  %v715_v21 = vld [vmem:[%s1452_s29 + $0x80] sm:$0xff]  ;;  %v560_v27 = vpack.c.bf16 %v532_v20, %v530_v19  ;;  %v555_v19 = vld [vmem:[%s1452_s29 + $0x2b8] sm:$0xff]  ;;  %v557_v20 = vld [vmem:[%s1452_s29 + $0x2e8] sm:$0xff] }
  0x53   : > { %606 = vmatprep.mubr.bf16.mxu1 %v559_v5  ;;  %791 = vmatprep.mubr.bf16.mxu0 %v744_v6  ;;  %v745_v28 = vpack.c.bf16 %v717_v23, %v715_v21  ;;  %v731_v5 = vld [vmem:[%s1452_s29 + $0x200] sm:$0xff]  ;;  %v733_v6 = vld [vmem:[%s1452_s29 + $0x230] sm:$0xff]  ;;  %v740_v21 = vld [vmem:[%s1452_s29 + $0x2c8] sm:$0xff] }
  0x54   : > { %v753_v12 = vpack.c.bf16 %v733_v6, %v731_v5  ;;  %v742_v23 = vld [vmem:[%s1452_s29 + $0x2f8] sm:$0xff] }
  0x55   : > { %1070 = vmatpush3.bf16.msra.mxu1 %v1563_v22  ;;  %1134 = vmatpush3.bf16.msra.mxu0 %v1563_v22  ;;  %v722_v22 = vld [vmem:[%s1452_s29 + $0x118] sm:$0xff] }
  0x56   : > { %v748_v30 = vpack.c.bf16 %v722_v22, %v720_v26  ;;  %v573_v26 = vpack.c.bf16 %v557_v20, %v555_v19  ;;  %v758_v22 = vpack.c.bf16 %v742_v23, %v740_v21 }
  0x58   : > { %607 = vmatmul.mubr.bf16.vlgmr.msra.gmra.mxu1 %v558_v15  ;;  %792 = vmatmul.mubr.bf16.vlgmr.msra.gmra.mxu0 %v743_v16  ;;  %v550_v15 = vld [vmem:[%s1452_s29 + $0x250] sm:$0xff]  ;;  %v552_v16 = vld [vmem:[%s1452_s29 + $0x280] sm:$0xff] }
  0x59   : > { %614 = vmatprep.mubr.bf16.mxu1 %v561_v17  ;;  %799 = vmatprep.mubr.bf16.mxu0 %v746_v18  ;;  %v735_v17 = vld [vmem:[%s1452_s29 + $0x260] sm:$0xff]  ;;  %v737_v18 = vld [vmem:[%s1452_s29 + $0x290] sm:$0xff]  ;;  %v570_v24 = vpack.c.bf16 %v552_v16, %v550_v15 }
  0x5a   : > { %v755_v25 = vpack.c.bf16 %v737_v18, %v735_v17 }
  0x60   : > { %615 = vmatmul.mubr.bf16.gmra.mxu1 %v560_v27  ;;  %800 = vmatmul.mubr.bf16.gmra.mxu0 %v745_v28  ;;  %v554_v27 = vld [vmem:[%s1452_s29 + $0x2b0] sm:$0xff]  ;;  %v556_v28 = vld [vmem:[%s1452_s29 + $0x2e0] sm:$0xff] }
  0x61   : > { %622 = vmatprep.mubr.bf16.mxu1 %v563_v29  ;;  %807 = vmatprep.mubr.bf16.mxu0 %v748_v30  ;;  %v739_v29 = vld [vmem:[%s1452_s29 + $0x2c0] sm:$0xff]  ;;  %v741_v30 = vld [vmem:[%s1452_s29 + $0x2f0] sm:$0xff]  ;;  %v572_v31 = vpack.c.bf16 %v556_v28, %v554_v27 }
  0x62   : > { %v757_v32 = vpack.c.bf16 %v741_v30, %v739_v29 }
  0x68   : > { %623 = vmatmul.mubr.bf16.gmra.mxu1 %v562_v39  ;;  %808 = vmatmul.mubr.bf16.gmra.mxu0 %v747_v40 }
  0x69   : > { %630 = vmatprep.mubr.bf16.mxu1 %v565_v41  ;;  %815 = vmatprep.mubr.bf16.mxu0 %v750_v42 }
  0x70   : > { %631 = vmatmul.mubr.bf16.gmra.mxu1 %v564_v51  ;;  %816 = vmatmul.mubr.bf16.gmra.mxu0 %v749_v52  ;;  %v1698_v51 = vld [vmem:[%s1792_s2] ss:$0 sm:$0xff] }
  0x71   : > { %638 = vmatprep.mubr.bf16.mxu1 %v567_v53  ;;  %823 = vmatprep.mubr.bf16.mxu0 %v752_v54 }
  0x78   : > { %639 = vmatmul.mubr.bf16.gmra.mxu1 %v566_v63  ;;  %824 = vmatmul.mubr.bf16.gmra.mxu0 %v751_v0 }
  0x79   : > { %646 = vmatprep.mubr.bf16.mxu1 %v569_v1  ;;  %831 = vmatprep.mubr.bf16.mxu0 %v754_v2 }
  0x80   : > { %647 = vmatmul.mubr.bf16.gmra.mxu1 %v568_v11  ;;  %832 = vmatmul.mubr.bf16.gmra.mxu0 %v753_v12 }
  0x81   : > { %654 = vmatprep.mubr.bf16.mxu1 %v571_v13  ;;  %839 = vmatprep.mubr.bf16.mxu0 %v756_v14 }
  0x88   : > { %655 = vmatmul.mubr.bf16.gmra.mxu1 %v570_v24  ;;  %840 = vmatmul.mubr.bf16.gmra.mxu0 %v755_v25 }
  0x89   : > { %662 = vmatprep.mubr.bf16.mxu1 %v573_v26  ;;  %847 = vmatprep.mubr.bf16.mxu0 %v758_v22 }
  0x90   : > { %663 = vmatmul.mubr.bf16.gmra.mxu1 %v572_v31  ;;  %848 = vmatmul.mubr.bf16.gmra.mxu0 %v757_v32 }
  0xf8   : > { %v1007_v33 = vpop.f32.mrf.mxu0  ;;  %v1031_v34 = vpop.f32.mrf.mxu1 }
  0xfa   : > { %v1008_v35 = vpop.f32.mrf.mxu0  ;;  %v1032_v36 = vpop.f32.mrf.mxu1 }
  0xfb   : > { %v1009_v48 = vadd.f32 %v1008_v35, %v1007_v33  ;;  %v1033_v13 = vadd.f32 %v1032_v36, %v1031_v34 }
  0xfc   : > { %v1010_v37 = vpop.f32.mrf.mxu0  ;;  %v1034_v38 = vpop.f32.mrf.mxu1 }
  0xfd   : > { %v424_v57 = vadd.f32 %v1009_v48, %v1698_v51  ;;  %v456_v21 = vadd.f32 %v1033_v13, %v1698_v51 }
  0xfe   : > { %v1011_v39 = vpop.f32.mrf.mxu0  ;;  %v1035_v40 = vpop.f32.mrf.mxu1 }
  0xff   : > { %v1012_v47 = vadd.f32 %v1011_v39, %v1010_v37  ;;  %v1036_v17 = vadd.f32 %v1035_v40, %v1034_v38 }
 0x100   : > { %v1013_v41 = vpop.f32.mrf.mxu0  ;;  %v1037_v42 = vpop.f32.mrf.mxu1 }
 0x101   : > { %v427_v55 = vadd.f32 %v1012_v47, %v1698_v51  ;;  %v459_v28 = vadd.f32 %v1036_v17, %v1698_v51 }
 0x102   : > { %v1014_v43 = vpop.f32.mrf.mxu0  ;;  %v1038_v44 = vpop.f32.mrf.mxu1 }
 0x103   : > { %v1015_v52 = vadd.f32 %v1014_v43, %v1013_v41  ;;  %1257 = vtanh.f32 %v427_v55  ;;  %v1039_v23 = vadd.f32 %v1038_v44, %v1037_v42 }
 0x104   : > { %v1016_v45 = vpop.f32.mrf.mxu0  ;;  %v1040_v46 = vpop.f32.mrf.mxu1  ;;  %1259 = vtanh.f32 %v424_v57 }
 0x105   : > { %v432_v60 = vadd.f32 %v1015_v52, %v1698_v51  ;;  %v464_v34 = vadd.f32 %v1039_v23, %v1698_v51 }
 0x106   : > { %v1017_v49 = vpop.f32.mrf.mxu0  ;;  %v1041_v50 = vpop.f32.mrf.mxu1 }
 0x107   : > { %v1018_v56 = vadd.f32 %v1017_v49, %v1016_v45  ;;  %1261 = vtanh.f32 %v432_v60  ;;  %v1042_v29 = vadd.f32 %v1041_v50, %v1040_v46 }
 0x108   : > { %v1019_v53 = vpop.f32.mrf.mxu0  ;;  %v1043_v54 = vpop.f32.mrf.mxu1 }
 0x109   : > { %v435_v0 = vadd.f32 %v1018_v56, %v1698_v51  ;;  %v467_v40 = vadd.f32 %v1042_v29, %v1698_v51 }
 0x10a   : > { %v1020_v58 = vpop.f32.mrf.mxu0  ;;  %v1044_v59 = vpop.f32.mrf.mxu1 }
 0x10b   : > { %v1021_v61 = vadd.f32 %v1020_v58, %v1019_v53  ;;  %1263 = vtanh.f32 %v435_v0  ;;  %v1045_v35 = vadd.f32 %v1044_v59, %v1043_v54 }
 0x10c   : > { %v1022_v62 = vpop.f32.mrf.mxu0  ;;  %v1046_v63 = vpop.f32.mrf.mxu1 }
 0x10d   : > { %v440_v3 = vadd.f32 %v1021_v61, %v1698_v51  ;;  %v472_v46 = vadd.f32 %v1045_v35, %v1698_v51 }
 0x10e   : > { %v1023_v1 = vpop.f32.mrf.mxu0  ;;  %v1047_v2 = vpop.f32.mrf.mxu1 }
 0x10f   : > { %v1024_v4 = vadd.f32 %v1023_v1, %v1022_v62  ;;  %1265 = vtanh.f32 %v440_v3  ;;  %v1048_v41 = vadd.f32 %v1047_v2, %v1046_v63 }
 0x110   : > { %v1025_v5 = vpop.f32.mrf.mxu0  ;;  %v1049_v6 = vpop.f32.mrf.mxu1 }
 0x111   : > { %v443_v7 = vadd.f32 %v1024_v4, %v1698_v51  ;;  %v1258_v25 = vpop.eup %1257  ;;  %v475_v53 = vadd.f32 %v1048_v41, %v1698_v51 }
 0x112   : > { %v1026_v8 = vpop.f32.mrf.mxu0  ;;  %v1050_v9 = vpop.f32.mrf.mxu1 }
 0x113   : > { %v1027_v10 = vadd.f32 %v1026_v8, %v1025_v5  ;;  %1267 = vtanh.f32 %v443_v7  ;;  %v1260_v27 = vpop.eup %1259  ;;  %v1051_v47 = vadd.f32 %v1050_v9, %v1049_v6 }
 0x114   : > { %v1028_v11 = vpop.f32.mrf.mxu0  ;;  %v1052_v12 = vpop.f32.mrf.mxu1  ;;  %v503_v33 = vadd.f32 %v1260_v27, %v1258_v25 }
 0x115   : > { %v448_v14 = vadd.f32 %v1027_v10, %v1698_v51  ;;  %v1262_v30 = vpop.eup %1261  ;;  %v480_v59 = vadd.f32 %v1051_v47, %v1698_v51 }
 0x116   : > { %v1029_v15 = vpop.f32.mrf.mxu0  ;;  %v1053_v16 = vpop.f32.mrf.mxu1  ;;  %v504_v39 = vadd.f32 %v1262_v30, %v503_v33 }
 0x117   : > { %1269 = vtanh.f32 %v448_v14  ;;  %v1030_v18 = vadd.f32 %v1029_v15, %v1028_v11  ;;  %v1054_v54 = vadd.f32 %v1053_v16, %v1052_v12 }
 0x118   : > { %v1707_v19 = vpop.f32.mrf.mxu1  ;;  %v1709_v20 = vpop.f32.mrf.mxu0 }
 0x119   : > { %v451_v24 = vadd.f32 %v1030_v18, %v1698_v51  ;;  %v1264_v36 = vpop.eup %1263  ;;  %v483_v63 = vadd.f32 %v1054_v54, %v1698_v51 }
 0x11a   : > { %v1713_v26 = vpop.f32.mrf.mxu1  ;;  %v1715_v22 = vpop.f32.mrf.mxu0  ;;  %v505_v45 = vadd.f32 %v1264_v36, %v504_v39 }
 0x11b   : > { %1271 = vtanh.f32 %v451_v24  ;;  %v1137_v47 = vadd.f32 %v1715_v22, %v1709_v20 }
 0x11c   : > { %v1718_v31 = vpop.f32.mrf.mxu1  ;;  %v1720_v32 = vpop.f32.mrf.mxu0  ;;  %1273 = vtanh.f32 %v456_v21 }
 0x11d   : > { %1275 = vtanh.f32 %v459_v28  ;;  %v1266_v42 = vpop.eup %1265  ;;  %v1073_v28 = vadd.f32 %v1713_v26, %v1707_v19  ;;  %v794_v20 = vadd.f32 %v1137_v47, %v1698_v51 }
 0x11e   : > { %v1075_v37 = vpop.f32.mrf.mxu1  ;;  %v1139_v38 = vpop.f32.mrf.mxu0  ;;  %1277 = vtanh.f32 %v464_v34  ;;  %v506_v52 = vadd.f32 %v1266_v42, %v505_v45 }
 0x11f   : > { %1279 = vtanh.f32 %v467_v40  ;;  %v1076_v30 = vadd.f32 %v1075_v37, %v1718_v31  ;;  %v1140_v36 = vadd.f32 %v1139_v38, %v1720_v32 }
 0x120   : > { %v1077_v43 = vpop.f32.mrf.mxu1  ;;  %v1724_v44 = vpop.f32.mrf.mxu0  ;;  %1281 = vtanh.f32 %v472_v46  ;;  %v609_v46 = vadd.f32 %v1073_v28, %v1698_v51 }
 0x121   : > { %v1268_v48 = vpop.eup %1267  ;;  %1283 = vtanh.f32 %v475_v53  ;;  %v612_v19 = vadd.f32 %v1076_v30, %v1698_v51  ;;  %v797_v32 = vadd.f32 %v1140_v36, %v1698_v51 }
 0x122   : > { %v1078_v49 = vpop.f32.mrf.mxu1  ;;  %v1142_v50 = vpop.f32.mrf.mxu0  ;;  %v507_v58 = vadd.f32 %v1268_v48, %v506_v52  ;;  %1285 = vtanh.f32 %v480_v59 }
 0x123   : > { %1287 = vtanh.f32 %v483_v63  ;;  %v1079_v40 = vadd.f32 %v1078_v49, %v1077_v43  ;;  %v1143_v26 = vadd.f32 %v1142_v50, %v1724_v44 }
 0x124   : > { %v1270_v55 = vpop.eup %1269  ;;  %v1080_v56 = vpop.f32.mrf.mxu1  ;;  %1289 = vtanh.f32 %v609_v46 }
 0x125   : > { %v1144_v57 = vpop.f32.mrf.mxu0  ;;  %v508_v62 = vadd.f32 %v1270_v55, %v507_v58  ;;  %v617_v43 = vadd.f32 %v1079_v40, %v1698_v51  ;;  %1291 = vtanh.f32 %v612_v19  ;;  %v802_v58 = vadd.f32 %v1143_v26, %v1698_v51 }
 0x126   : > { %v1081_v60 = vpop.f32.mrf.mxu1  ;;  %1293 = vtanh.f32 %v797_v32 }
 0x127   : > { %v1145_v61 = vpop.f32.mrf.mxu0  ;;  %v1082_v38 = vadd.f32 %v1081_v60, %v1080_v56  ;;  %1295 = vtanh.f32 %v617_v43 }
 0x128   : > { %v1272_v0 = vpop.eup %1271  ;;  %v1083_v1 = vpop.f32.mrf.mxu1  ;;  %v1146_v49 = vadd.f32 %v1145_v61, %v1144_v57  ;;  %1297 = vtanh.f32 %v794_v20 }
 0x129   : > { %v1147_v2 = vpop.f32.mrf.mxu0  ;;  %v509_v3 = vadd.f32 %v1272_v0, %v508_v62  ;;  %v1274_v4 = vpop.eup %1273  ;;  %v620_v56 = vadd.f32 %v1082_v38, %v1698_v51  ;;  %1299 = vtanh.f32 %v802_v58 }
 0x12a   : > { %v1084_v5 = vpop.f32.mrf.mxu1  ;;  %v1276_v8 = vpop.eup %1275  ;;  %v805_v57 = vadd.f32 %v1146_v49, %v1698_v51 }
 0x12b   : > { %v1148_v6 = vpop.f32.mrf.mxu0  ;;  %v510_v7 = vadd.f32 %v1274_v4, %v509_v3  ;;  %v1278_v12 = vpop.eup %1277  ;;  %v1085_v22 = vadd.f32 %v1084_v5, %v1083_v1  ;;  %1301 = vtanh.f32 %v620_v56 }
 0x12c   : > { %v1086_v9 = vpop.f32.mrf.mxu1  ;;  %v1280_v16 = vpop.eup %1279  ;;  %v1149_v44 = vadd.f32 %v1148_v6, %v1147_v2  ;;  %1303 = vtanh.f32 %v805_v57 }
 0x12d   : > { %v1150_v10 = vpop.f32.mrf.mxu0  ;;  %v511_v11 = vadd.f32 %v1276_v8, %v510_v7  ;;  %v1282_v23 = vpop.eup %1281  ;;  %v625_v1 = vadd.f32 %v1085_v22, %v1698_v51 }
 0x12e   : > { %v1087_v13 = vpop.f32.mrf.mxu1  ;;  %v1284_v29 = vpop.eup %1283  ;;  %v810_v2 = vadd.f32 %v1149_v44, %v1698_v51 }
 0x12f   : > { %v1151_v14 = vpop.f32.mrf.mxu0  ;;  %v512_v15 = vadd.f32 %v1278_v12, %v511_v11  ;;  %v1286_v39 = vpop.eup %1285  ;;  %v1088_v60 = vadd.f32 %v1087_v13, %v1086_v9  ;;  %1305 = vtanh.f32 %v625_v1 }
 0x130   : > { %v1089_v17 = vpop.f32.mrf.mxu1  ;;  %v1288_v48 = vpop.eup %1287  ;;  %v1152_v61 = vadd.f32 %v1151_v14, %v1150_v10  ;;  %1307 = vtanh.f32 %v810_v2 }
 0x131   : > { %v1153_v18 = vpop.f32.mrf.mxu0  ;;  %v513_v21 = vadd.f32 %v1280_v16, %v512_v15  ;;  %v628_v9 = vadd.f32 %v1088_v60, %v1698_v51 }
 0x132   : > { %v1090_v24 = vpop.f32.mrf.mxu1  ;;  %v813_v10 = vadd.f32 %v1152_v61, %v1698_v51 }
 0x133   : > { %v1154_v25 = vpop.f32.mrf.mxu0  ;;  %v514_v27 = vadd.f32 %v1282_v23, %v513_v21  ;;  %v1091_v4 = vadd.f32 %v1090_v24, %v1089_v17  ;;  %1309 = vtanh.f32 %v628_v9 }
 0x134   : > { %v1092_v33 = vpop.f32.mrf.mxu1  ;;  %v1155_v5 = vadd.f32 %v1154_v25, %v1153_v18  ;;  %v502_v18 = vld [vmem:[%s1447_s26] sm:$0x1]  ;;  %1311 = vtanh.f32 %v813_v10 }
 0x135   : > { %v1156_v34 = vpop.f32.mrf.mxu0  ;;  %v515_v35 = vadd.f32 %v1284_v29, %v514_v27  ;;  %v633_v16 = vadd.f32 %v1091_v4, %v1698_v51 }
 0x136   : > { %v1093_v41 = vpop.f32.mrf.mxu1  ;;  %v818_v21 = vadd.f32 %v1155_v5, %v1698_v51 }
 0x137   : > { %v1157_v42 = vpop.f32.mrf.mxu0  ;;  %v516_v45 = vadd.f32 %v1286_v39, %v515_v35  ;;  %v1094_v11 = vadd.f32 %v1093_v41, %v1092_v33  ;;  %1313 = vtanh.f32 %v633_v16  ;;  %v1290_v41 = vpop.eup %1289 }
 0x138   : > { %v1095_v31 = vpop.f32.mrf.mxu1  ;;  %v1158_v12 = vadd.f32 %v1157_v42, %v1156_v34  ;;  %1315 = vtanh.f32 %v818_v21 }
 0x139   : > { %v1159_v37 = vpop.f32.mrf.mxu0  ;;  %v517_v52 = vadd.f32 %v1288_v48, %v516_v45  ;;  %v636_v28 = vadd.f32 %v1094_v11, %v1698_v51  ;;  %v1292_v48 = vpop.eup %1291 }
 0x13a   : > { %v1096_v53 = vpop.f32.mrf.mxu1  ;;  %v821_v30 = vadd.f32 %v1158_v12, %v1698_v51 }
 0x13b   : > { %v1160_v54 = vpop.f32.mrf.mxu0  ;;  %v518_v55 = vrot.slane %v517_v52, 4  ;;  %v1097_v17 = vadd.f32 %v1096_v53, %v1095_v31  ;;  %1317 = vtanh.f32 %v636_v28  ;;  %v1294_v31 = vpop.eup %1293 }
 0x13c   : > { %v1098_v50 = vpop.f32.mrf.mxu1  ;;  %v1161_v23 = vadd.f32 %v1160_v54, %v1159_v37  ;;  %1319 = vtanh.f32 %v821_v30  ;;  %v1296_v43 = vpop.eup %1295 }
 0x13d   : > { %v1162_v59 = vpop.f32.mrf.mxu0  ;;  %v519_v62 = vadd.f32 %v518_v55, %v517_v52  ;;  %v641_v39 = vadd.f32 %v1097_v17, %v1698_v51  ;;  %v1298_v54 = vpop.eup %1297  ;;  %v688_v55 = vadd.f32 %v1292_v48, %v1290_v41 }
 0x13e   : > { %v1099_v63 = vpop.f32.mrf.mxu1  ;;  %v826_v42 = vadd.f32 %v1161_v23, %v1698_v51  ;;  %v873_v56 = vadd.f32 %v1298_v54, %v1294_v31 }
 0x13f   : > { %v1163_v0 = vpop.f32.mrf.mxu0  ;;  %v520_v3 = vrot.slane %v519_v62, 2  ;;  %v1100_v29 = vadd.f32 %v1099_v63, %v1098_v50  ;;  %1321 = vtanh.f32 %v641_v39  ;;  %v1300_v50 = vpop.eup %1299  ;;  %v689_v60 = vadd.f32 %v1296_v43, %v688_v55 }
 0x140   : > { %v1101_v6 = vpop.f32.mrf.mxu1  ;;  %v1164_v33 = vadd.f32 %v1163_v0, %v1162_v59  ;;  %1323 = vtanh.f32 %v826_v42  ;;  %v874_v5 = vadd.f32 %v1300_v50, %v873_v56 }
 0x141   : > { %v1165_v7 = vpop.f32.mrf.mxu0  ;;  %v521_v8 = vadd.f32 %v520_v3, %v519_v62  ;;  %v644_v19 = vadd.f32 %v1100_v29, %v1698_v51  ;;  %v1302_v62 = vpop.eup %1301 }
 0x142   : > { %v1102_v13 = vpop.f32.mrf.mxu1  ;;  %v829_v37 = vadd.f32 %v1164_v33, %v1698_v51  ;;  %v1304_v0 = vpop.eup %1303  ;;  %v690_v11 = vadd.f32 %v1302_v62, %v689_v60 }
 0x143   : > { %v1166_v14 = vpop.f32.mrf.mxu0  ;;  %v522_v15 = vrot.slane %v521_v8, 1  ;;  %v1103_v40 = vadd.f32 %v1102_v13, %v1101_v6  ;;  %1325 = vtanh.f32 %v644_v19  ;;  %v1306_v2 = vpop.eup %1305  ;;  %v875_v13 = vadd.f32 %v1304_v0, %v874_v5 }
 0x144   : > { %v1104_v24 = vpop.f32.mrf.mxu1  ;;  %v1167_v45 = vadd.f32 %v1166_v14, %v1165_v7  ;;  %1327 = vtanh.f32 %v829_v37  ;;  %v1308_v9 = vpop.eup %1307 }
 0x145   : > { %v1168_v25 = vpop.f32.mrf.mxu0  ;;  %v523_v27 = vadd.f32 %v522_v15, %v521_v8  ;;  %v649_v49 = vadd.f32 %v1103_v40, %v1698_v51  ;;  %v1310_v12 = vpop.eup %1309 }
 0x146   : > { %v1105_v34 = vpop.f32.mrf.mxu1  ;;  %v834_v20 = vadd.f32 %v1167_v45, %v1698_v51  ;;  %v1312_v17 = vpop.eup %1311 }
 0x147   : > { %v1169_v35 = vpop.f32.mrf.mxu0  ;;  %v524_v36 = vadd.f32 %v523_v27, %v502_v18  ;;  %v1106_v26 = vadd.f32 %v1105_v34, %v1104_v24  ;;  %1329 = vtanh.f32 %v649_v49  ;;  %v691_v18 = vadd.f32 %v1306_v2, %v690_v11  ;;  %v1314_v24 = vpop.eup %1313 }
 0x148   : > { %v1107_v46 = vpop.f32.mrf.mxu1  ;;  %v1170_v52 = vadd.f32 %v1169_v35, %v1168_v25  ;;  %1331 = vtanh.f32 %v834_v20  ;;  %v876_v25 = vadd.f32 %v1308_v9, %v875_v13  ;;  %v1316_v29 = vpop.eup %1315 }
 0x149   : > { %v1171_v47 = vpop.f32.mrf.mxu0  ;;  %525 = vst [vmem:[%s1447_s26] sm:$0x1] %v524_v36  ;;  %v652_v59 = vadd.f32 %v1106_v26, %v1698_v51  ;;  %v692_v30 = vadd.f32 %v1310_v12, %v691_v18  ;;  %v1318_v35 = vpop.eup %1317 }
 0x14a   : > { %v1108_v32 = vpop.f32.mrf.mxu1  ;;  %v837_v57 = vadd.f32 %v1170_v52, %v1698_v51  ;;  %v877_v36 = vadd.f32 %v1312_v17, %v876_v25  ;;  %v1320_v41 = vpop.eup %1319  ;;  %v872_v25 = vld [vmem:[%s1447_s26 + $0x2] sm:$0x1] }
 0x14b   : > { %v1172_v38 = vpop.f32.mrf.mxu0  ;;  %v1109_v53 = vadd.f32 %v1108_v32, %v1107_v46  ;;  %1333 = vtanh.f32 %v652_v59  ;;  %v693_v42 = vadd.f32 %v1314_v24, %v692_v30 }
 0x14c   : > { %v1173_v22 = vadd.f32 %v1172_v38, %v1171_v47  ;;  %v1110_v58 = vpop.f32.mrf.mxu1  ;;  %1335 = vtanh.f32 %v837_v57  ;;  %v1322_v47 = vpop.eup %1321  ;;  %v878_v48 = vadd.f32 %v1316_v29, %v877_v36 }
 0x14d   : > { %v1174_v44 = vpop.f32.mrf.mxu0  ;;  %v657_v3 = vadd.f32 %v1109_v53, %v1698_v51  ;;  %v1324_v19 = vpop.eup %1323  ;;  %v694_v26 = vadd.f32 %v1318_v35, %v693_v42 }
 0x14e   : > { %v1111_v61 = vpop.f32.mrf.mxu1  ;;  %v842_v6 = vadd.f32 %v1173_v22, %v1698_v51  ;;  %v879_v32 = vadd.f32 %v1320_v41, %v878_v48 }
 0x14f   : > { %v1175_v63 = vpop.f32.mrf.mxu0  ;;  %v1112_v1 = vadd.f32 %v1111_v61, %v1110_v58  ;;  %1337 = vtanh.f32 %v657_v3  ;;  %v695_v43 = vadd.f32 %v1322_v47, %v694_v26 }
 0x150   : > { %v1176_v4 = vadd.f32 %v1175_v63, %v1174_v44  ;;  %v1113_v7 = vpop.f32.mrf.mxu1  ;;  %1339 = vtanh.f32 %v842_v6  ;;  %v1326_v52 = vpop.eup %1325  ;;  %v880_v53 = vadd.f32 %v1324_v19, %v879_v32 }
 0x151   : > { %v1177_v8 = vpop.f32.mrf.mxu0  ;;  %v660_v10 = vadd.f32 %v1112_v1, %v1698_v51  ;;  %v1328_v38 = vpop.eup %1327  ;;  %v696_v55 = vadd.f32 %v1326_v52, %v695_v43 }
 0x152   : > { %v845_v14 = vadd.f32 %v1176_v4, %v1698_v51  ;;  %v1114_v15 = vpop.f32.mrf.mxu1  ;;  %v881_v22 = vadd.f32 %v1328_v38, %v880_v53 }
 0x153   : > { %v1178_v16 = vpop.f32.mrf.mxu0  ;;  %v1115_v21 = vadd.f32 %v1114_v15, %v1113_v7  ;;  %1341 = vtanh.f32 %v660_v10 }
 0x154   : > { %v1179_v23 = vadd.f32 %v1178_v16, %v1177_v8  ;;  %v1116_v27 = vpop.f32.mrf.mxu1  ;;  %1343 = vtanh.f32 %v845_v14  ;;  %v1330_v49 = vpop.eup %1329 }
 0x155   : > { %v1180_v28 = vpop.f32.mrf.mxu0  ;;  %v665_v33 = vadd.f32 %v1115_v21, %v1698_v51  ;;  %v1332_v54 = vpop.eup %1331  ;;  %v697_v44 = vadd.f32 %v1330_v49, %v696_v55  ;;  %v687_v21 = vld [vmem:[%s1447_s26 + $0x1] sm:$0x1] }
 0x156   : > { %v850_v34 = vadd.f32 %v1179_v23, %v1698_v51  ;;  %v1117_v39 = vpop.f32.mrf.mxu1  ;;  %v882_v59 = vadd.f32 %v1332_v54, %v881_v22 }
 0x157   : > { %v1181_v40 = vpop.f32.mrf.mxu0  ;;  %1345 = vtanh.f32 %v665_v33  ;;  %v1118_v45 = vadd.f32 %v1117_v39, %v1116_v27 }
 0x158   : > { %v1182_v46 = vadd.f32 %v1181_v40, %v1180_v28  ;;  %1347 = vtanh.f32 %v850_v34  ;;  %v1334_v20 = vpop.eup %1333 }
 0x159   : > { %v668_v31 = vadd.f32 %v1118_v45, %v1698_v51  ;;  %v1336_v58 = vpop.eup %1335  ;;  %v698_v56 = vadd.f32 %v1334_v20, %v697_v44 }
 0x15a   : > { %v853_v37 = vadd.f32 %v1182_v46, %v1698_v51  ;;  %v883_v51 = vadd.f32 %v1336_v58, %v882_v59 }
 0x15b   : > { %1349 = vtanh.f32 %v668_v31 }
 0x15c   : > { %1351 = vtanh.f32 %v853_v37  ;;  %v1338_v50 = vpop.eup %1337 }
 0x15d   : > { %v1340_v62 = vpop.eup %1339  ;;  %v699_v61 = vadd.f32 %v1338_v50, %v698_v56 }
 0x15e   : > { %v884_v0 = vadd.f32 %v1340_v62, %v883_v51 }
 0x160   : > { %v1342_v60 = vpop.eup %1341 }
 0x161   : > { %v1344_v57 = vpop.eup %1343  ;;  %v700_v1 = vadd.f32 %v1342_v60, %v699_v61 }
 0x162   : > { %v885_v4 = vadd.f32 %v1344_v57, %v884_v0 }
 0x164   : > { %v1346_v63 = vpop.eup %1345 }
 0x165   : > { %v1348_v3 = vpop.eup %1347  ;;  %v701_v2 = vadd.f32 %v1346_v63, %v700_v1 }
 0x166   : > { %v886_v6 = vadd.f32 %v1348_v3, %v885_v4 }
 0x168   : > { %v1350_v5 = vpop.eup %1349 }
 0x169   : > { %v1352_v7 = vpop.eup %1351  ;;  %v702_v8 = vadd.f32 %v1350_v5, %v701_v2 }
 0x16a   : > { %v887_v9 = vadd.f32 %v1352_v7, %v886_v6 }
 0x16b   : > { %v703_v11 = vrot.slane %v702_v8, 4 }
 0x16c   : > { %v888_v10 = vrot.slane %v887_v9, 4 }
 0x16d   : > { %v704_v12 = vadd.f32 %v703_v11, %v702_v8 }
 0x16e   : > { %v889_v13 = vadd.f32 %v888_v10, %v887_v9 }
 0x16f   : > { %v705_v14 = vrot.slane %v704_v12, 2 }
 0x170   : > { %v890_v15 = vrot.slane %v889_v13, 2 }
 0x171   : > { %v706_v16 = vadd.f32 %v705_v14, %v704_v12 }
 0x172   : > { %v891_v17 = vadd.f32 %v890_v15, %v889_v13 }
 0x173   : > { %v707_v18 = vrot.slane %v706_v16, 1 }
 0x174   : > { %v892_v23 = vrot.slane %v891_v17, 1 }
 0x175   : > { %v708_v24 = vadd.f32 %v707_v18, %v706_v16 }
 0x176   : > { %v893_v27 = vadd.f32 %v892_v23, %v891_v17 }
 0x177   : > { %v709_v28 = vadd.f32 %v708_v24, %v687_v21 }
 0x178   : > { %v894_v29 = vadd.f32 %v893_v27, %v872_v25 }
 0x179   : > { %710 = vst [vmem:[%s1447_s26 + $0x1] sm:$0x1] %v709_v28 }
 0x17a   : > { %895 = vst [vmem:[%s1447_s26 + $0x2] sm:$0x1] %v894_v29 }
 0x17b PF: > { %s13_s16 = sadd.s32 1, %s1391_s16   ;;  %s1794_s12 = smov %s1383_s14 }
 0x17c   : > { %p10_p8 = scmp.ge.s32.totalorder %s13_s16, 6   ;;  %s1795_s13 = smov %s1387_s15 }
 0x17d   : > { %s1796_s14 = smov %s1799_s17  ;;  %s1797_s15 = smov %s1803_s18 }
 0x17e   :  { %12 = sbr.rel (!%p10_p8) target bundleno = 3 (0x3), region = 66 }

</bundles_post_ra>
